<compile_context>
chip_gen: v6e
topology: v6e:2x2x1
jax: 0.10.0
libtpu: 0.0.40
codegen_flags: <defaults>
</compile_context>

<pallas_src>
import jax
import jax.numpy as jnp
from jax.experimental import pallas as pl
from jax.experimental.pallas import tpu as pltpu

_MIB = 1024 * 1024


def _round_up(x, m):
    return (x + m - 1) // m * m


def _vmem_capacity_bytes():
    try:
        return int(pltpu.get_tpu_info().vmem_capacity_bytes)
    except Exception:  # no HW info -> assume the smallest part (v7x, 64 MiB/TC)
        return 64 * _MIB


def _footprint_bytes(tm, ti, H, x_itemsize, w_itemsize, x_bufs, o_bufs):
    """Per-grid-step VMEM bytes, including in-kernel f32 temporaries."""
    w = 2 * (2 * H * ti * w_itemsize)        # gate + up tiles, double-buffered
    w += 2 * ti * H * w_itemsize             # down tile, double-buffered
    tok = (x_bufs * tm * H * x_itemsize      # x tile
           + o_bufs * tm * H * x_itemsize    # output tile
           + tm * H * 4)                     # resident f32 accumulator scratch
    tmp = 4 * tm * ti * 4 + tm * ti * w_itemsize   # g, u, h (f32) + cast of h
    return w + tok + tmp


def _plan_tiles(M, H, I, x_itemsize, w_itemsize):
    """Pick (tm, ti, x_bufs, o_bufs) from shapes, dtype and VMEM capacity."""
    vmem_cap = _vmem_capacity_bytes()
    small_vmem = vmem_cap <= 80 * _MIB              # v7x-class (64 MiB / TC)
    budget = min(int(vmem_cap * 0.85), 112 * _MIB)

    # Sublane packing of the token dim: 8 rows/vreg-group for 32-bit,
    # 16 for bf16/f16, 32 for int8/fp8.
    sub = 8 if x_itemsize >= 4 else (16 if x_itemsize == 2 else 32)
    tm_cap = min(1024, _round_up(M, sub))           # decode: one token tile
    tm_cands = [t for t in (1024, 512, 256, 128, 64, 32, 16, 8) if t <= tm_cap]
    if not tm_cands or tm_cands[0] != tm_cap:
        tm_cands = [tm_cap] + tm_cands
    # Prefer ti that divides I exactly (true for Mistral shapes) so the weight
    # matrices are never padded on the per-call path.
    ti_cands = [c for c in (1024, 512, 256, 128) if I % c == 0] or [256]

    def best_plan(x_bufs, o_bufs):
        # Shrink ti before tm: tm sets the weight-stream arithmetic intensity
        # (= tm flops per weight byte); ti only sets reduction-step count.
        for tm_c in tm_cands:
            for ti_c in ti_cands:
                if _footprint_bytes(tm_c, ti_c, H, x_itemsize, w_itemsize,
                                    x_bufs, o_bufs) <= budget:
                    return tm_c, ti_c
        return tm_cands[-1], ti_cands[-1]

    # Default: fully double-buffered pipeline.
    x_bufs, o_bufs = 2, 2
    tm, ti = best_plan(x_bufs, o_bufs)

    # If the token tile fell below the weight-stream roofline (~620 flops/byte
    # on v7x, ~656 on v6e), retry with single-buffered x / out tiles: they only
    # change once per nI reduction steps, so the exposed DMA is ~1-2% while the
    # freed VMEM lets tm recover to 1024 on 64 MiB parts.
    if tm < min(tm_cap, 1024):
        sb = (1, 1) if small_vmem else (1, 2)
        tm_sb, ti_sb = best_plan(*sb)
        if tm_sb > tm or (tm_sb == tm and ti_sb > ti):
            (x_bufs, o_bufs), (tm, ti) = sb, (tm_sb, ti_sb)

    return tm, ti, x_bufs, o_bufs, vmem_cap


def _spec(shape, index_map, buffers=None):
    """BlockSpec, optionally single-buffered; falls back if pipeline_mode is
    unavailable (only reachable on big-model shapes, never in the demo)."""
    if buffers is not None and buffers != 2 and hasattr(pl, "Buffered"):
        try:
            return pl.BlockSpec(shape, index_map,
                                pipeline_mode=pl.Buffered(buffers))
        except TypeError:
            pass
    return pl.BlockSpec(shape, index_map)


def _mlp_kernel(x_ref, wg_ref, wu_ref, wd_ref, o_ref, acc_ref):
    # grid axis 0: token tiles          ("parallel"  -> megacore sharding)
    # grid axis 1: intermediate tiles   ("arbitrary" -> reduction, acc resident)
    j = pl.program_id(1)

    @pl.when(j == 0)
    def _():
        acc_ref[...] = jnp.zeros_like(acc_ref)

    x = x_ref[...]
    # Two narrow dots (instead of one fused (tm, 2*ti) f32 slab + slice):
    # identical MXU utilization (K=H, N=ti>=128), half the peak f32 VMEM.
    g = jnp.dot(x, wg_ref[...], preferred_element_type=jnp.float32)
    u = jnp.dot(x, wu_ref[...], preferred_element_type=jnp.float32)
    h = (g * jax.nn.sigmoid(g)) * u               # SiLU(g) * u, f32
    # Partial down projection, accumulated in f32 across intermediate tiles.
    acc_ref[...] += jnp.dot(h.astype(wd_ref.dtype), wd_ref[...],
                            preferred_element_type=jnp.float32)

    @pl.when(j == pl.num_programs(1) - 1)
    def _():
        o_ref[...] = acc_ref[...].astype(o_ref.dtype)


def mistral_mlp(x, w_gate, w_up, w_down, *, tm=None, ti=None):
    """x: (B, S, H); w_gate/w_up: (H, I); w_down: (I, H). Returns (B, S, H)."""
    B, S, H = x.shape
    I = w_gate.shape[1]
    assert w_gate.shape == (H, I) and w_up.shape == (H, I) and w_down.shape == (I, H)
    M = B * S
    x2d = x.reshape(M, H)

    x_itemsize = jnp.dtype(x.dtype).itemsize
    w_itemsize = jnp.dtype(w_gate.dtype).itemsize
    tm_a, ti_a, x_bufs, o_bufs, vmem_cap = _plan_tiles(
        M, H, I, x_itemsize, w_itemsize)
    tm = tm_a if tm is None else tm
    ti = ti_a if ti is None else ti
    assert tm % 8 == 0 and ti % 128 == 0, "tm must be a multiple of 8, ti of 128"
    # Note: user-supplied tm < ~620 makes large-M prefill weight-DMA bound on
    # v6e/v7x -- the auto planner keeps tm at 1024 whenever M allows.

    # Hot path: no weight touch-up when ti divides I (true for Mistral shapes).
    # Ragged I falls back to an exact one-off zero pad; pre-pad at load time if
    # this ever lands on the per-call path.
    I_pad = _round_up(I, ti)
    if I_pad != I:
        pad_c = I_pad - I
        w_gate = jnp.pad(w_gate, ((0, 0), (0, pad_c)))
        w_up = jnp.pad(w_up, ((0, 0), (0, pad_c)))
        w_down = jnp.pad(w_down, ((0, pad_c), (0, 0)))

    # Zero-pad the token dim up to a multiple of tm (padded rows sliced off).
    M_pad = _round_up(M, tm)
    if M_pad != M:
        x2d = jnp.pad(x2d, ((0, M_pad - M), (0, 0)))

    # VMEM limit from the actual tile footprint + Mosaic internal scratch.
    fp = _footprint_bytes(tm, ti, H, x_itemsize, w_itemsize, x_bufs, o_bufs)
    vmem_limit = int(min(max(32 * _MIB, fp + 8 * _MIB), vmem_cap))

    out2d = pl.pallas_call(
        _mlp_kernel,
        out_shape=jax.ShapeDtypeStruct((M_pad, H), x.dtype),
        grid_spec=pltpu.PrefetchScalarGridSpec(
            num_scalar_prefetch=0,
            grid=(M_pad // tm, I_pad // ti),
            in_specs=[
                _spec((tm, H), lambda i, j: (i, 0), buffers=x_bufs),  # x tile
                _spec((H, ti), lambda i, j: (0, j)),                  # gate W
                _spec((H, ti), lambda i, j: (0, j)),                  # up W
                _spec((ti, H), lambda i, j: (j, 0)),                  # down W
            ],
            out_specs=_spec((tm, H), lambda i, j: (i, 0), buffers=o_bufs),
            scratch_shapes=[pltpu.VMEM((tm, H), jnp.float32)],
        ),
        compiler_params=pltpu.CompilerParams(
            dimension_semantics=("parallel", "arbitrary"),
            vmem_limit_bytes=vmem_limit),
    )(x2d, w_gate, w_up, w_down)

    return out2d[:M].reshape(B, S, H)


def _reference(x, w_gate, w_up, w_down):
    g = x @ w_gate
    u = x @ w_up
    return (jax.nn.silu(g) * u) @ w_down


if __name__ == "__main__":
    # Small config consistent with MistralMLP (hidden_size, intermediate_size).
    batch, seq = 2, 8
    hidden_size = 256
    intermediate_size = 512

    key = jax.random.PRNGKey(0)
    kx, kg, ku, kd = jax.random.split(key, 4)

    x = jax.random.normal(kx, (batch, seq, hidden_size), dtype=jnp.float32)
    # nn.Linear(hidden, intermediate).weight has shape (intermediate, hidden);
    # we store the transpose (hidden, intermediate) for row-major matmul.
    w_gate = jax.random.normal(kg, (hidden_size, intermediate_size),
                               dtype=jnp.float32) * 0.02
    w_up = jax.random.normal(ku, (hidden_size, intermediate_size),
                             dtype=jnp.float32) * 0.02
    w_down = jax.random.normal(kd, (intermediate_size, hidden_size),
                               dtype=jnp.float32) * 0.02

    out = mistral_mlp(x, w_gate, w_up, w_down)
    out = jax.block_until_ready(out)

    ref = _reference(x, w_gate, w_up, w_down)
    assert out.shape == (batch, seq, hidden_size)
    assert jnp.allclose(out, ref, atol=1e-4, rtol=1e-4), "mismatch vs reference"

    print("KERNEL_OK")
</pallas_src>

<mosaic_0001>
module attributes {stable_mosaic.version = 11 : i64} {
  func.func @_mlp_kernel(%arg0: i32, %arg1: i32, %arg2: memref<16x256xf32, #tpu.memory_space<vmem>>, %arg3: memref<256x512xf32, #tpu.memory_space<vmem>>, %arg4: memref<256x512xf32, #tpu.memory_space<vmem>>, %arg5: memref<512x256xf32, #tpu.memory_space<vmem>>, %arg6: memref<16x256xf32, #tpu.memory_space<vmem>>, %arg7: memref<16x256xf32, #tpu.memory_space<vmem>>) attributes {dimension_semantics = [#tpu.dimension_semantics<parallel>, #tpu.dimension_semantics<arbitrary>], iteration_bounds = array<i64: 1, 1>, scalar_prefetch = 0 : i64, scratch_operands = 1 : i64, tpu.core_type = #tpu.core_type<tc>, window_params = [{transform_indices = @transform_0, window_bounds = array<i64: 16, 256>}, {transform_indices = @transform_1, window_bounds = array<i64: 256, 512>}, {transform_indices = @transform_2, window_bounds = array<i64: 256, 512>}, {transform_indices = @transform_3, window_bounds = array<i64: 512, 256>}, {transform_indices = @transform_4, window_bounds = array<i64: 16, 256>}]} {
    %c0_i32 = arith.constant 0 : i32
    %0 = arith.cmpi eq, %arg1, %c0_i32 : i32
    %1 = arith.extui %0 : i1 to i32
    %c0_i32_0 = arith.constant 0 : i32
    %2 = arith.cmpi ne, %1, %c0_i32_0 : i32
    scf.if %2 {
      %cst_17 = arith.constant 0.000000e+00 : f32
      %23 = vector.broadcast %cst_17 : f32 to vector<16x256xf32>
      %c0_18 = arith.constant 0 : index
      %c0_19 = arith.constant 0 : index
      %24 = vector.load %arg7[%c0_18, %c0_19] : memref<16x256xf32, #tpu.memory_space<vmem>>, vector<16x256xf32>
      tpu.vector_store %arg7[%c0_18, %c0_19], %23 {strides = array<i32>} : memref<16x256xf32, #tpu.memory_space<vmem>>, vector<16x256xf32>,
    } else {
    }
    %c0 = arith.constant 0 : index
    %c0_1 = arith.constant 0 : index
    %3 = vector.load %arg2[%c0, %c0_1] : memref<16x256xf32, #tpu.memory_space<vmem>>, vector<16x256xf32>
    %c0_2 = arith.constant 0 : index
    %c0_3 = arith.constant 0 : index
    %4 = vector.load %arg3[%c0_2, %c0_3] : memref<256x512xf32, #tpu.memory_space<vmem>>, vector<256x512xf32>
    %cst = arith.constant dense<0.000000e+00> : vector<16x512xf32>
    %5 = tpu.matmul %3, %4, %cst {dimension_numbers = #tpu.dot_dimension_numbers<[1], [0], [0], [1], [0, 0, 1, 1], [], []>} : vector<16x256xf32>, vector<256x512xf32>, vector<16x512xf32> -> vector<16x512xf32>
    %c0_4 = arith.constant 0 : index
    %c0_5 = arith.constant 0 : index
    %6 = vector.load %arg4[%c0_4, %c0_5] : memref<256x512xf32, #tpu.memory_space<vmem>>, vector<256x512xf32>
    %cst_6 = arith.constant dense<0.000000e+00> : vector<16x512xf32>
    %7 = tpu.matmul %3, %6, %cst_6 {dimension_numbers = #tpu.dot_dimension_numbers<[1], [0], [0], [1], [0, 0, 1, 1], [], []>} : vector<16x256xf32>, vector<256x512xf32>, vector<16x512xf32> -> vector<16x512xf32>
    %8 = arith.negf %5 : vector<16x512xf32>
    %9 = math.exp %8 : vector<16x512xf32>
    %cst_7 = arith.constant 1.000000e+00 : f32
    %10 = vector.broadcast %cst_7 : f32 to vector<16x512xf32>
    %11 = arith.addf %10, %9 : vector<16x512xf32>
    %12 = arith.divf %10, %11 : vector<16x512xf32>
    %13 = arith.mulf %5, %12 : vector<16x512xf32>
    %14 = arith.mulf %13, %7 : vector<16x512xf32>
    %c0_8 = arith.constant 0 : index
    %c0_9 = arith.constant 0 : index
    %15 = vector.load %arg7[%c0_8, %c0_9] : memref<16x256xf32, #tpu.memory_space<vmem>>, vector<16x256xf32>
    %c0_10 = arith.constant 0 : index
    %c0_11 = arith.constant 0 : index
    %16 = vector.load %arg5[%c0_10, %c0_11] : memref<512x256xf32, #tpu.memory_space<vmem>>, vector<512x256xf32>
    %cst_12 = arith.constant dense<0.000000e+00> : vector<16x256xf32>
    %17 = tpu.matmul %14, %16, %cst_12 {dimension_numbers = #tpu.dot_dimension_numbers<[1], [0], [0], [1], [0, 0, 1, 1], [], []>} : vector<16x512xf32>, vector<512x256xf32>, vector<16x256xf32> -> vector<16x256xf32>
    %18 = arith.addf %15, %17 : vector<16x256xf32>
    %c0_13 = arith.constant 0 : index
    %c0_14 = arith.constant 0 : index
    %19 = vector.load %arg7[%c0_13, %c0_14] : memref<16x256xf32, #tpu.memory_space<vmem>>, vector<16x256xf32>
    tpu.vector_store %arg7[%c0_13, %c0_14], %18 {strides = array<i32>} : memref<16x256xf32, #tpu.memory_space<vmem>>, vector<16x256xf32>,
    %c0_i32_15 = arith.constant 0 : i32
    %20 = arith.cmpi eq, %arg1, %c0_i32_15 : i32
    %21 = arith.extui %20 : i1 to i32
    %c0_i32_16 = arith.constant 0 : i32
    %22 = arith.cmpi ne, %21, %c0_i32_16 : i32
    scf.if %22 {
      %c0_17 = arith.constant 0 : index
      %c0_18 = arith.constant 0 : index
      %23 = vector.load %arg7[%c0_17, %c0_18] : memref<16x256xf32, #tpu.memory_space<vmem>>, vector<16x256xf32>
      %c0_19 = arith.constant 0 : index
      %c0_20 = arith.constant 0 : index
      %24 = vector.load %arg6[%c0_19, %c0_20] : memref<16x256xf32, #tpu.memory_space<vmem>>, vector<16x256xf32>
      tpu.vector_store %arg6[%c0_19, %c0_20], %23 {strides = array<i32>} : memref<16x256xf32, #tpu.memory_space<vmem>>, vector<16x256xf32>,
    } else {
    }
    return
  }
  func.func @transform_0(%arg0: i32, %arg1: i32) -> (i32, i32) {
    %c0_i32 = arith.constant 0 : i32
    %c0_i32_0 = arith.constant 0 : i32
    return %arg0, %c0_i32 : i32, i32
  }
  func.func @transform_1(%arg0: i32, %arg1: i32) -> (i32, i32) {
    %c0_i32 = arith.constant 0 : i32
    %c0_i32_0 = arith.constant 0 : i32
    return %c0_i32, %arg1 : i32, i32
  }
  func.func @transform_2(%arg0: i32, %arg1: i32) -> (i32, i32) {
    %c0_i32 = arith.constant 0 : i32
    %c0_i32_0 = arith.constant 0 : i32
    return %c0_i32, %arg1 : i32, i32
  }
  func.func @transform_3(%arg0: i32, %arg1: i32) -> (i32, i32) {
    %c0_i32 = arith.constant 0 : i32
    %c0_i32_0 = arith.constant 0 : i32
    return %arg1, %c0_i32 : i32, i32
  }
  func.func @transform_4(%arg0: i32, %arg1: i32) -> (i32, i32) {
    %c0_i32 = arith.constant 0 : i32
    %c0_i32_0 = arith.constant 0 : i32
    return %arg0, %c0_i32 : i32, i32
  }
}

</mosaic_0001>

<bundles_post_ra>
// kernel: tpu_custom_call.1
= control target key start
LH: loop header
LB: loop body
LE: loop exit
PB: predicated region body
PF: predicated region fallthrough
CT: control target
= control target key end

     0   :  { %9 = vsyncpa [#allocation4], 0  ;;  %s1290_s0 = inlined_call_operand.hbm [shape: f32[16,256], index: 0, kind: input, shape index: {}]   ;;  %s1291_s1 = inlined_call_operand.hbm [shape: f32[256,512], index: 1, kind: input, shape index: {}]   ;;  %s1292_s2 = inlined_call_operand.hbm [shape: f32[256,512], index: 2, kind: input, shape index: {}]   ;;  %s1293_s3 = inlined_call_operand.hbm [shape: f32[512,256], index: 3, kind: input, shape index: {}]   ;;  %s1294_s4 = inlined_call_operand.hbm [shape: f32[16,256], index: 4, kind: output, shape index: {}]  }
   0x1   :  { %10 = vsyncpa [#allocation7], 0 }
   0x2   :  { %11 = vsyncpa [#allocation10], 0 }
   0x3   :  { %12 = vsyncpa [#allocation5], 0  ;;  %s1194_s15 = smov [#allocation6]  }
   0x4   :  { %s30_s16 = sshll.u32 %s1194_s15, 4  ;;  %s31_s16 = int_to_ptr.vmem [resolvable:$true] %s30_s16 }
   0x5   :  { %s1094_s17 = scalar_lea.vmem %s31_s16, 16384  ;;  %p1099_p1 = scmp.lt.s32.totalorder %s31_s16, %s31_s16 }
   0x6   :  { %p1095_p0 = scmp.ne.s32.totalorder %s31_s16, %s1094_s17  ;;  %p1100_p2 = scmp.lt.s32.totalorder %s1094_s17, %s1094_s17 }
   0x8   :  { %p1101_p3 = por %p1100_p2, %p1099_p1 }
   0xa   :  { %p1102_p4 = pnand %p1101_p3, %p1095_p0 }
   0xc   :  { %1105 = shalt.err (!%p1102_p4)
}
   0xd   :  { %s1195_s18 = smov 512   ;;  %s1196_s19 = smov 32  }
   0xe   :  { %36 = dma.hbm_to_vmem [thread:$0]  %s1291_s1, 16384, %s31_s16, [#allocation7], %s1195_s18, %s1195_s18, %s1196_s19  }
   0xf   :  { %s1197_s22 = smov [#allocation3]  }
  0x10   :  { %s18_s23 = sshll.u32 %s1197_s22, 4  ;;  %s19_s23 = int_to_ptr.vmem [resolvable:$true] %s18_s23 }
  0x11   :  { %s1114_s24 = scalar_lea.vmem %s19_s23, 512  ;;  %p1119_p6 = scmp.lt.s32.totalorder %s19_s23, %s19_s23 }
  0x12   :  { %p1115_p5 = scmp.ne.s32.totalorder %s19_s23, %s1114_s24  ;;  %p1120_p7 = scmp.lt.s32.totalorder %s1114_s24, %s1114_s24 }
  0x14   :  { %p1121_p8 = por %p1120_p7, %p1119_p6 }
  0x16   :  { %p1122_p9 = pnand %p1121_p8, %p1115_p5 }
  0x18   :  { %1125 = shalt.err (!%p1122_p9)
}
  0x19   :  { %s1198_s25 = smov 256   ;;  %s1199_s26 = smov 16  }
  0x1a   :  { %24 = dma.hbm_to_vmem [thread:$0]  %s1290_s0, 512, %s19_s23, [#allocation4], %s1198_s25, %s1198_s25, %s1199_s26  }
  0x1b   :  { %s1200_s1 = smov [#allocation8]   ;;  %s1201_s30 = smov [#allocation9]  }
  0x1c   :  { %s42_s29 = sshll.u32 %s1200_s1, 4  ;;  %s54_s5 = sshll.u32 %s1201_s30, 4  ;;  %s43_s29 = int_to_ptr.vmem [resolvable:$true] %s42_s29  ;;  %s55_s5 = int_to_ptr.vmem [resolvable:$true] %s54_s5 }
  0x1d   :  { %s1134_s6 = scalar_lea.vmem %s43_s29, 16384  ;;  %p1139_p11 = scmp.lt.s32.totalorder %s43_s29, %s43_s29 }
  0x1e   :  { %p1135_p10 = scmp.ne.s32.totalorder %s43_s29, %s1134_s6  ;;  %p1140_p12 = scmp.lt.s32.totalorder %s1134_s6, %s1134_s6 }
  0x20   :  { %p1141_p13 = por %p1140_p12, %p1139_p11 }
  0x22   :  { %p1142_p0 = pnand %p1141_p13, %p1135_p10 }
  0x24   :  { %1145 = shalt.err (!%p1142_p0)
}
  0x25   :  { %48 = dma.hbm_to_vmem [thread:$0]  %s1292_s2, 16384, %s43_s29, [#allocation7], %s1195_s18, %s1195_s18, %s1196_s19  }
  0x26   :  { %s1154_s0 = scalar_lea.vmem %s55_s5, 16384  ;;  %p1159_p2 = scmp.lt.s32.totalorder %s55_s5, %s55_s5 }
  0x27   :  { %p1155_p1 = scmp.ne.s32.totalorder %s55_s5, %s1154_s0  ;;  %p1160_p3 = scmp.lt.s32.totalorder %s1154_s0, %s1154_s0 }
  0x29   :  { %p1161_p4 = por %p1160_p3, %p1159_p2 }
  0x2b   :  { %p1162_p5 = pnand %p1161_p4, %p1155_p1 }
  0x2d   :  { %1165 = shalt.err (!%p1162_p5)
}
  0x2e   :  { %60 = dma.hbm_to_vmem [thread:$0]  %s1293_s3, 16384, %s55_s5, [#allocation10], %s1198_s25, %s1198_s25, %s1199_s26  }
  0x2f   :  { %1186 = dma.done.wait [#allocation4], 512  }
  0x30   :  { %1187 = vsyncadd [#allocation4], 4294966784 }
  0x31   :  { %1188 = dma.done.wait [#allocation7], 32768  }
  0x32   :  { %1189 = vsyncadd [#allocation7], 4294934528 }
  0x33   :  { %1190 = dma.done.wait [#allocation10], 16384  }
  0x34   :  { %1191 = vsyncadd [#allocation10], 4294950912  ;;  %v146_v0 = vld [vmem:[#allocation6 + $0x1e8] sm:$0xff]  ;;  %v148_v1 = vld [vmem:[#allocation6 + $0x1f8] sm:$0xff]  ;;  %s1202_s2 = smov [#allocation11]  }
  0x35   :  { %v145_v2 = vld [vmem:[#allocation6 + $0x1e0] sm:$0xff]  ;;  %213 = vmatprep.subr.mxu0 %v146_v0  ;;  %290 = vmatprep.subr.mxu1 %v148_v1  ;;  %v147_v3 = vld [vmem:[#allocation6 + $0x1f0] sm:$0xff]  ;;  %v142_v4 = vld [vmem:[#allocation6 + $0x1c8] sm:$0xff]  ;;  %s1023_s3 = sshll.u32 %s1202_s2, 4  ;;  %s1024_s3 = int_to_ptr.vmem [resolvable:$true] %s1023_s3 }
  0x36   :  { %v144_v5 = vld [vmem:[#allocation6 + $0x1d8] sm:$0xff]  ;;  %214 = vmatpush1.msra.mxu0 %v145_v2  ;;  %291 = vmatpush1.msra.mxu1 %v147_v3  ;;  %v141_v6 = vld [vmem:[#allocation6 + $0x1c0] sm:$0xff]  ;;  %v143_v7 = vld [vmem:[#allocation6 + $0x1d0] sm:$0xff]  ;;  %s1166_s11 = scalar_lea.vmem %s1024_s3, 512  ;;  %p1171_p7 = scmp.lt.s32.totalorder %s1024_s3, %s1024_s3 }
  0x37   :  { %v138_v8 = vld [vmem:[#allocation6 + $0x1a8] sm:$0xff]  ;;  %215 = vmatprep.subr.mxu0 %v142_v4  ;;  %292 = vmatprep.subr.mxu1 %v144_v5  ;;  %v140_v9 = vld [vmem:[#allocation6 + $0x1b8] sm:$0xff]  ;;  %v137_v10 = vld [vmem:[#allocation6 + $0x1a0] sm:$0xff]  ;;  %p1167_p6 = scmp.ne.s32.totalorder %s1024_s3, %s1166_s11  ;;  %p1172_p8 = scmp.lt.s32.totalorder %s1166_s11, %s1166_s11 }
  0x38   :  { %v139_v11 = vld [vmem:[#allocation6 + $0x1b0] sm:$0xff]  ;;  %216 = vmatpush1.msra.mxu0 %v141_v6  ;;  %293 = vmatpush1.msra.mxu1 %v143_v7  ;;  %v134_v12 = vld [vmem:[#allocation6 + $0x188] sm:$0xff]  ;;  %v136_v13 = vld [vmem:[#allocation6 + $0x198] sm:$0xff] }
  0x39   :  { %217 = vmatprep.subr.mxu0 %v138_v8  ;;  %294 = vmatprep.subr.mxu1 %v140_v9  ;;  %v133_v14 = vld [vmem:[#allocation6 + $0x180] sm:$0xff]  ;;  %v135_v15 = vld [vmem:[#allocation6 + $0x190] sm:$0xff]  ;;  %v130_v16 = vld [vmem:[#allocation6 + $0x168] sm:$0xff]  ;;  %p1173_p9 = por %p1172_p8, %p1171_p7 }
  0x3a   :  { %218 = vmatpush1.msra.mxu0 %v137_v10  ;;  %295 = vmatpush1.msra.mxu1 %v139_v11  ;;  %v132_v17 = vld [vmem:[#allocation6 + $0x178] sm:$0xff]  ;;  %v129_v18 = vld [vmem:[#allocation6 + $0x160] sm:$0xff]  ;;  %v131_v19 = vld [vmem:[#allocation6 + $0x170] sm:$0xff] }
  0x3b   :  { %219 = vmatprep.subr.mxu0 %v134_v12  ;;  %296 = vmatprep.subr.mxu1 %v136_v13  ;;  %v126_v20 = vld [vmem:[#allocation6 + $0x148] sm:$0xff]  ;;  %v128_v21 = vld [vmem:[#allocation6 + $0x158] sm:$0xff]  ;;  %v125_v22 = vld [vmem:[#allocation6 + $0x140] sm:$0xff]  ;;  %p1174_p10 = pnand %p1173_p9, %p1167_p6 }
  0x3c   :  { %220 = vmatpush1.msra.mxu0 %v133_v14  ;;  %297 = vmatpush1.msra.mxu1 %v135_v15  ;;  %v127_v23 = vld [vmem:[#allocation6 + $0x150] sm:$0xff]  ;;  %v122_v24 = vld [vmem:[#allocation6 + $0x128] sm:$0xff]  ;;  %v124_v25 = vld [vmem:[#allocation6 + $0x138] sm:$0xff] }
  0x3d   :  { %221 = vmatprep.subr.mxu0 %v130_v16  ;;  %298 = vmatprep.subr.mxu1 %v132_v17  ;;  %v121_v26 = vld [vmem:[#allocation6 + $0x120] sm:$0xff]  ;;  %v123_v27 = vld [vmem:[#allocation6 + $0x130] sm:$0xff]  ;;  %v118_v28 = vld [vmem:[#allocation6 + $0x108] sm:$0xff] }
  0x3e   :  { %222 = vmatpush1.msra.mxu0 %v129_v18  ;;  %299 = vmatpush1.msra.mxu1 %v131_v19  ;;  %v120_v29 = vld [vmem:[#allocation6 + $0x118] sm:$0xff]  ;;  %v117_v30 = vld [vmem:[#allocation6 + $0x100] sm:$0xff]  ;;  %v119_v31 = vld [vmem:[#allocation6 + $0x110] sm:$0xff] }
  0x3f   :  { %223 = vmatprep.subr.mxu0 %v126_v20  ;;  %300 = vmatprep.subr.mxu1 %v128_v21  ;;  %v114_v32 = vld [vmem:[#allocation6 + $0xe8] sm:$0xff]  ;;  %v116_v33 = vld [vmem:[#allocation6 + $0xf8] sm:$0xff]  ;;  %v113_v34 = vld [vmem:[#allocation6 + $0xe0] sm:$0xff] }
  0x40   :  { %224 = vmatpush1.msra.mxu0 %v125_v22  ;;  %301 = vmatpush1.msra.mxu1 %v127_v23  ;;  %v115_v35 = vld [vmem:[#allocation6 + $0xf0] sm:$0xff]  ;;  %v110_v36 = vld [vmem:[#allocation6 + $0xc8] sm:$0xff]  ;;  %v112_v37 = vld [vmem:[#allocation6 + $0xd8] sm:$0xff] }
  0x41   :  { %225 = vmatprep.subr.mxu0 %v122_v24  ;;  %302 = vmatprep.subr.mxu1 %v124_v25  ;;  %v109_v38 = vld [vmem:[#allocation6 + $0xc0] sm:$0xff]  ;;  %v111_v39 = vld [vmem:[#allocation6 + $0xd0] sm:$0xff]  ;;  %v106_v40 = vld [vmem:[#allocation6 + $0xa8] sm:$0xff] }
  0x42   :  { %226 = vmatpush1.msra.mxu0 %v121_v26  ;;  %303 = vmatpush1.msra.mxu1 %v123_v27  ;;  %v108_v41 = vld [vmem:[#allocation6 + $0xb8] sm:$0xff]  ;;  %v105_v42 = vld [vmem:[#allocation6 + $0xa0] sm:$0xff]  ;;  %v107_v43 = vld [vmem:[#allocation6 + $0xb0] sm:$0xff] }
  0x43   :  { %227 = vmatprep.subr.mxu0 %v118_v28  ;;  %304 = vmatprep.subr.mxu1 %v120_v29  ;;  %v102_v44 = vld [vmem:[#allocation6 + $0x88] sm:$0xff]  ;;  %v104_v45 = vld [vmem:[#allocation6 + $0x98] sm:$0xff]  ;;  %v101_v46 = vld [vmem:[#allocation6 + $0x80] sm:$0xff] }
  0x44   :  { %228 = vmatpush1.msra.mxu0 %v117_v30  ;;  %305 = vmatpush1.msra.mxu1 %v119_v31  ;;  %v103_v47 = vld [vmem:[#allocation6 + $0x90] sm:$0xff]  ;;  %v98_v48 = vld [vmem:[#allocation6 + $0x68] sm:$0xff]  ;;  %v100_v49 = vld [vmem:[#allocation6 + $0x78] sm:$0xff] }
  0x45   :  { %229 = vmatprep.subr.mxu0 %v114_v32  ;;  %306 = vmatprep.subr.mxu1 %v116_v33  ;;  %v97_v50 = vld [vmem:[#allocation6 + $0x60] sm:$0xff]  ;;  %v99_v51 = vld [vmem:[#allocation6 + $0x70] sm:$0xff]  ;;  %v94_v52 = vld [vmem:[#allocation6 + $0x48] sm:$0xff] }
  0x46   :  { %230 = vmatpush1.msra.mxu0 %v113_v34  ;;  %307 = vmatpush1.msra.mxu1 %v115_v35  ;;  %v96_v53 = vld [vmem:[#allocation6 + $0x58] sm:$0xff]  ;;  %v93_v54 = vld [vmem:[#allocation6 + $0x40] sm:$0xff]  ;;  %v95_v55 = vld [vmem:[#allocation6 + $0x50] sm:$0xff] }
  0x47   :  { %231 = vmatprep.subr.mxu0 %v110_v36  ;;  %308 = vmatprep.subr.mxu1 %v112_v37  ;;  %v90_v56 = vld [vmem:[#allocation6 + $0x28] sm:$0xff]  ;;  %v92_v57 = vld [vmem:[#allocation6 + $0x38] sm:$0xff]  ;;  %v89_v58 = vld [vmem:[#allocation6 + $0x20] sm:$0xff] }
  0x48   :  { %232 = vmatpush1.msra.mxu0 %v109_v38  ;;  %309 = vmatpush1.msra.mxu1 %v111_v39  ;;  %v91_v59 = vld [vmem:[#allocation6 + $0x30] sm:$0xff]  ;;  %v86_v60 = vld [vmem:[#allocation6 + $0x8] sm:$0xff]  ;;  %v88_v61 = vld [vmem:[#allocation6 + $0x18] sm:$0xff] }
  0x49   :  { %233 = vmatprep.subr.mxu0 %v106_v40  ;;  %310 = vmatprep.subr.mxu1 %v108_v41  ;;  %v85_v62 = vld [vmem:[#allocation6] sm:$0xff]  ;;  %v87_v63 = vld [vmem:[#allocation6 + $0x10] sm:$0xff]  ;;  %v210_v0 = vld [vmem:[#allocation6 + $0x3e8] sm:$0xff] }
  0x4a   :  { %234 = vmatpush1.msra.mxu0 %v105_v42  ;;  %311 = vmatpush1.msra.mxu1 %v107_v43  ;;  %v212_v1 = vld [vmem:[#allocation6 + $0x3f8] sm:$0xff]  ;;  %v209_v2 = vld [vmem:[#allocation6 + $0x3e0] sm:$0xff]  ;;  %v211_v3 = vld [vmem:[#allocation6 + $0x3f0] sm:$0xff] }
  0x4b   :  { %235 = vmatprep.subr.mxu0 %v102_v44  ;;  %312 = vmatprep.subr.mxu1 %v104_v45  ;;  %v206_v4 = vld [vmem:[#allocation6 + $0x3c8] sm:$0xff]  ;;  %v208_v5 = vld [vmem:[#allocation6 + $0x3d8] sm:$0xff]  ;;  %v205_v6 = vld [vmem:[#allocation6 + $0x3c0] sm:$0xff] }
  0x4c   :  { %236 = vmatpush1.msra.mxu0 %v101_v46  ;;  %313 = vmatpush1.msra.mxu1 %v103_v47  ;;  %v207_v7 = vld [vmem:[#allocation6 + $0x3d0] sm:$0xff]  ;;  %v202_v8 = vld [vmem:[#allocation6 + $0x3a8] sm:$0xff]  ;;  %v204_v9 = vld [vmem:[#allocation6 + $0x3b8] sm:$0xff] }
  0x4d   :  { %237 = vmatprep.subr.mxu0 %v98_v48  ;;  %314 = vmatprep.subr.mxu1 %v100_v49  ;;  %v201_v10 = vld [vmem:[#allocation6 + $0x3a0] sm:$0xff]  ;;  %v203_v11 = vld [vmem:[#allocation6 + $0x3b0] sm:$0xff]  ;;  %v198_v12 = vld [vmem:[#allocation6 + $0x388] sm:$0xff] }
  0x4e   :  { %238 = vmatpush1.msra.mxu0 %v97_v50  ;;  %315 = vmatpush1.msra.mxu1 %v99_v51  ;;  %v200_v13 = vld [vmem:[#allocation6 + $0x398] sm:$0xff]  ;;  %v197_v14 = vld [vmem:[#allocation6 + $0x380] sm:$0xff]  ;;  %v199_v15 = vld [vmem:[#allocation6 + $0x390] sm:$0xff] }
  0x4f   :  { %239 = vmatprep.subr.mxu0 %v94_v52  ;;  %316 = vmatprep.subr.mxu1 %v96_v53  ;;  %v194_v16 = vld [vmem:[#allocation6 + $0x368] sm:$0xff]  ;;  %v196_v17 = vld [vmem:[#allocation6 + $0x378] sm:$0xff]  ;;  %v193_v18 = vld [vmem:[#allocation6 + $0x360] sm:$0xff] }
  0x50   :  { %240 = vmatpush1.msra.mxu0 %v93_v54  ;;  %317 = vmatpush1.msra.mxu1 %v95_v55  ;;  %v195_v19 = vld [vmem:[#allocation6 + $0x370] sm:$0xff]  ;;  %v190_v20 = vld [vmem:[#allocation6 + $0x348] sm:$0xff]  ;;  %v192_v21 = vld [vmem:[#allocation6 + $0x358] sm:$0xff] }
  0x51   :  { %241 = vmatprep.subr.mxu0 %v90_v56  ;;  %318 = vmatprep.subr.mxu1 %v92_v57  ;;  %v189_v22 = vld [vmem:[#allocation6 + $0x340] sm:$0xff]  ;;  %v191_v23 = vld [vmem:[#allocation6 + $0x350] sm:$0xff]  ;;  %v186_v24 = vld [vmem:[#allocation6 + $0x328] sm:$0xff] }
  0x52   :  { %242 = vmatpush1.msra.mxu0 %v89_v58  ;;  %319 = vmatpush1.msra.mxu1 %v91_v59  ;;  %v188_v25 = vld [vmem:[#allocation6 + $0x338] sm:$0xff]  ;;  %v185_v26 = vld [vmem:[#allocation6 + $0x320] sm:$0xff]  ;;  %v187_v27 = vld [vmem:[#allocation6 + $0x330] sm:$0xff] }
  0x53   :  { %243 = vmatprep.subr.mxu0 %v86_v60  ;;  %320 = vmatprep.subr.mxu1 %v88_v61  ;;  %v182_v28 = vld [vmem:[#allocation6 + $0x308] sm:$0xff]  ;;  %v184_v29 = vld [vmem:[#allocation6 + $0x318] sm:$0xff]  ;;  %v181_v30 = vld [vmem:[#allocation6 + $0x300] sm:$0xff] }
  0x54   :  { %244 = vmatpush1.msra.mxu0 %v85_v62  ;;  %321 = vmatpush1.msra.mxu1 %v87_v63  ;;  %v183_v31 = vld [vmem:[#allocation6 + $0x310] sm:$0xff]  ;;  %v178_v32 = vld [vmem:[#allocation6 + $0x2e8] sm:$0xff]  ;;  %v180_v33 = vld [vmem:[#allocation6 + $0x2f8] sm:$0xff] }
  0x55   :  { %245 = vmatprep.subr.mxu0 %v210_v0  ;;  %322 = vmatprep.subr.mxu1 %v212_v1  ;;  %v177_v34 = vld [vmem:[#allocation6 + $0x2e0] sm:$0xff]  ;;  %v179_v35 = vld [vmem:[#allocation6 + $0x2f0] sm:$0xff]  ;;  %v174_v36 = vld [vmem:[#allocation6 + $0x2c8] sm:$0xff] }
  0x56   :  { %246 = vmatpush2.msra.mxu0 %v209_v2  ;;  %323 = vmatpush2.msra.mxu1 %v211_v3  ;;  %v176_v37 = vld [vmem:[#allocation6 + $0x2d8] sm:$0xff]  ;;  %v173_v38 = vld [vmem:[#allocation6 + $0x2c0] sm:$0xff]  ;;  %v175_v39 = vld [vmem:[#allocation6 + $0x2d0] sm:$0xff] }
  0x57   :  { %247 = vmatprep.subr.mxu0 %v206_v4  ;;  %324 = vmatprep.subr.mxu1 %v208_v5  ;;  %v170_v40 = vld [vmem:[#allocation6 + $0x2a8] sm:$0xff]  ;;  %v172_v41 = vld [vmem:[#allocation6 + $0x2b8] sm:$0xff]  ;;  %v169_v42 = vld [vmem:[#allocation6 + $0x2a0] sm:$0xff] }
  0x58   :  { %248 = vmatpush2.msra.mxu0 %v205_v6  ;;  %325 = vmatpush2.msra.mxu1 %v207_v7  ;;  %v171_v43 = vld [vmem:[#allocation6 + $0x2b0] sm:$0xff]  ;;  %v166_v44 = vld [vmem:[#allocation6 + $0x288] sm:$0xff]  ;;  %v168_v45 = vld [vmem:[#allocation6 + $0x298] sm:$0xff] }
  0x59   :  { %249 = vmatprep.subr.mxu0 %v202_v8  ;;  %326 = vmatprep.subr.mxu1 %v204_v9  ;;  %v165_v46 = vld [vmem:[#allocation6 + $0x280] sm:$0xff]  ;;  %v167_v47 = vld [vmem:[#allocation6 + $0x290] sm:$0xff]  ;;  %v162_v48 = vld [vmem:[#allocation6 + $0x268] sm:$0xff] }
  0x5a   :  { %250 = vmatpush2.msra.mxu0 %v201_v10  ;;  %327 = vmatpush2.msra.mxu1 %v203_v11  ;;  %v164_v49 = vld [vmem:[#allocation6 + $0x278] sm:$0xff]  ;;  %v161_v50 = vld [vmem:[#allocation6 + $0x260] sm:$0xff]  ;;  %v163_v51 = vld [vmem:[#allocation6 + $0x270] sm:$0xff] }
  0x5b   :  { %251 = vmatprep.subr.mxu0 %v198_v12  ;;  %328 = vmatprep.subr.mxu1 %v200_v13  ;;  %v158_v52 = vld [vmem:[#allocation6 + $0x248] sm:$0xff]  ;;  %v160_v53 = vld [vmem:[#allocation6 + $0x258] sm:$0xff]  ;;  %v157_v54 = vld [vmem:[#allocation6 + $0x240] sm:$0xff] }
  0x5c   :  { %252 = vmatpush2.msra.mxu0 %v197_v14  ;;  %329 = vmatpush2.msra.mxu1 %v199_v15  ;;  %v159_v55 = vld [vmem:[#allocation6 + $0x250] sm:$0xff]  ;;  %v154_v56 = vld [vmem:[#allocation6 + $0x228] sm:$0xff]  ;;  %v156_v57 = vld [vmem:[#allocation6 + $0x238] sm:$0xff] }
  0x5d   :  { %253 = vmatprep.subr.mxu0 %v194_v16  ;;  %330 = vmatprep.subr.mxu1 %v196_v17  ;;  %v153_v58 = vld [vmem:[#allocation6 + $0x220] sm:$0xff]  ;;  %v155_v59 = vld [vmem:[#allocation6 + $0x230] sm:$0xff]  ;;  %v150_v60 = vld [vmem:[#allocation6 + $0x208] sm:$0xff] }
  0x5e   :  { %254 = vmatpush2.msra.mxu0 %v193_v18  ;;  %331 = vmatpush2.msra.mxu1 %v195_v19  ;;  %v152_v61 = vld [vmem:[#allocation6 + $0x218] sm:$0xff]  ;;  %v149_v62 = vld [vmem:[#allocation6 + $0x200] sm:$0xff]  ;;  %v1252_v63 = vld [vmem:[#allocation3 + $0x8] sm:$0xff] }
  0x5f   :  { %255 = vmatprep.subr.mxu0 %v190_v20  ;;  %332 = vmatprep.subr.mxu1 %v192_v21  ;;  %v151_v0 = vld [vmem:[#allocation6 + $0x210] sm:$0xff]  ;;  %v1254_v1 = vld [vmem:[#allocation3] sm:$0xff]  ;;  %v428_v2 = vld [vmem:[#allocation8 + $0x1e8] sm:$0xff] }
  0x60   :  { %256 = vmatpush2.msra.mxu0 %v189_v22  ;;  %333 = vmatpush2.msra.mxu1 %v191_v23  ;;  %v430_v3 = vld [vmem:[#allocation8 + $0x1f8] sm:$0xff]  ;;  %v427_v4 = vld [vmem:[#allocation8 + $0x1e0] sm:$0xff]  ;;  %v429_v5 = vld [vmem:[#allocation8 + $0x1f0] sm:$0xff] }
  0x61   :  { %257 = vmatprep.subr.mxu0 %v186_v24  ;;  %334 = vmatprep.subr.mxu1 %v188_v25  ;;  %v424_v6 = vld [vmem:[#allocation8 + $0x1c8] sm:$0xff]  ;;  %v426_v7 = vld [vmem:[#allocation8 + $0x1d8] sm:$0xff]  ;;  %v423_v9 = vld [vmem:[#allocation8 + $0x1c0] sm:$0xff] }
  0x62   :  { %258 = vmatpush2.msra.mxu0 %v185_v26  ;;  %335 = vmatpush2.msra.mxu1 %v187_v27  ;;  %v1260_v8 = vld [vmem:[#allocation3 + $0x18] sm:$0xff]  ;;  %v425_v10 = vld [vmem:[#allocation8 + $0x1d0] sm:$0xff]  ;;  %v420_v12 = vld [vmem:[#allocation8 + $0x1a8] sm:$0xff] }
  0x63   :  { %259 = vmatprep.subr.mxu0 %v182_v28  ;;  %336 = vmatprep.subr.mxu1 %v184_v29  ;;  %v1262_v11 = vld [vmem:[#allocation3 + $0x10] sm:$0xff]  ;;  %v422_v13 = vld [vmem:[#allocation8 + $0x1b8] sm:$0xff]  ;;  %v419_v14 = vld [vmem:[#allocation8 + $0x1a0] sm:$0xff] }
  0x64   :  { %260 = vmatpush2.msra.mxu0 %v181_v30  ;;  %337 = vmatpush2.msra.mxu1 %v183_v31  ;;  %v421_v15 = vld [vmem:[#allocation8 + $0x1b0] sm:$0xff]  ;;  %v416_v16 = vld [vmem:[#allocation8 + $0x188] sm:$0xff]  ;;  %v418_v17 = vld [vmem:[#allocation8 + $0x198] sm:$0xff] }
  0x65   :  { %261 = vmatprep.subr.mxu0 %v178_v32  ;;  %338 = vmatprep.subr.mxu1 %v180_v33  ;;  %v415_v18 = vld [vmem:[#allocation8 + $0x180] sm:$0xff]  ;;  %v417_v19 = vld [vmem:[#allocation8 + $0x190] sm:$0xff]  ;;  %v412_v20 = vld [vmem:[#allocation8 + $0x168] sm:$0xff] }
  0x66   :  { %262 = vmatpush2.msra.mxu0 %v177_v34  ;;  %339 = vmatpush2.msra.mxu1 %v179_v35  ;;  %v414_v21 = vld [vmem:[#allocation8 + $0x178] sm:$0xff]  ;;  %v411_v22 = vld [vmem:[#allocation8 + $0x160] sm:$0xff]  ;;  %v413_v23 = vld [vmem:[#allocation8 + $0x170] sm:$0xff] }
  0x67   :  { %263 = vmatprep.subr.mxu0 %v174_v36  ;;  %340 = vmatprep.subr.mxu1 %v176_v37  ;;  %v408_v24 = vld [vmem:[#allocation8 + $0x148] sm:$0xff]  ;;  %v410_v25 = vld [vmem:[#allocation8 + $0x158] sm:$0xff]  ;;  %v407_v26 = vld [vmem:[#allocation8 + $0x140] sm:$0xff] }
  0x68   :  { %264 = vmatpush2.msra.mxu0 %v173_v38  ;;  %341 = vmatpush2.msra.mxu1 %v175_v39  ;;  %v409_v27 = vld [vmem:[#allocation8 + $0x150] sm:$0xff]  ;;  %v404_v28 = vld [vmem:[#allocation8 + $0x128] sm:$0xff]  ;;  %v406_v29 = vld [vmem:[#allocation8 + $0x138] sm:$0xff] }
  0x69   :  { %265 = vmatprep.subr.mxu0 %v170_v40  ;;  %342 = vmatprep.subr.mxu1 %v172_v41  ;;  %v403_v30 = vld [vmem:[#allocation8 + $0x120] sm:$0xff]  ;;  %v405_v31 = vld [vmem:[#allocation8 + $0x130] sm:$0xff]  ;;  %v400_v32 = vld [vmem:[#allocation8 + $0x108] sm:$0xff] }
  0x6a   :  { %266 = vmatpush2.msra.mxu0 %v169_v42  ;;  %343 = vmatpush2.msra.mxu1 %v171_v43  ;;  %v402_v33 = vld [vmem:[#allocation8 + $0x118] sm:$0xff]  ;;  %v399_v34 = vld [vmem:[#allocation8 + $0x100] sm:$0xff]  ;;  %v401_v35 = vld [vmem:[#allocation8 + $0x110] sm:$0xff] }
  0x6b   :  { %267 = vmatprep.subr.mxu0 %v166_v44  ;;  %344 = vmatprep.subr.mxu1 %v168_v45  ;;  %v396_v36 = vld [vmem:[#allocation8 + $0xe8] sm:$0xff]  ;;  %v398_v37 = vld [vmem:[#allocation8 + $0xf8] sm:$0xff]  ;;  %v395_v38 = vld [vmem:[#allocation8 + $0xe0] sm:$0xff] }
  0x6c   :  { %268 = vmatpush2.msra.mxu0 %v165_v46  ;;  %345 = vmatpush2.msra.mxu1 %v167_v47  ;;  %v397_v39 = vld [vmem:[#allocation8 + $0xf0] sm:$0xff]  ;;  %v392_v40 = vld [vmem:[#allocation8 + $0xc8] sm:$0xff]  ;;  %v394_v41 = vld [vmem:[#allocation8 + $0xd8] sm:$0xff] }
  0x6d   :  { %269 = vmatprep.subr.mxu0 %v162_v48  ;;  %346 = vmatprep.subr.mxu1 %v164_v49  ;;  %v391_v42 = vld [vmem:[#allocation8 + $0xc0] sm:$0xff]  ;;  %v393_v43 = vld [vmem:[#allocation8 + $0xd0] sm:$0xff]  ;;  %v388_v44 = vld [vmem:[#allocation8 + $0xa8] sm:$0xff] }
  0x6e   :  { %270 = vmatpush2.msra.mxu0 %v161_v50  ;;  %347 = vmatpush2.msra.mxu1 %v163_v51  ;;  %v390_v45 = vld [vmem:[#allocation8 + $0xb8] sm:$0xff]  ;;  %v387_v46 = vld [vmem:[#allocation8 + $0xa0] sm:$0xff]  ;;  %v389_v47 = vld [vmem:[#allocation8 + $0xb0] sm:$0xff] }
  0x6f   :  { %271 = vmatprep.subr.mxu0 %v158_v52  ;;  %348 = vmatprep.subr.mxu1 %v160_v53  ;;  %v384_v48 = vld [vmem:[#allocation8 + $0x88] sm:$0xff]  ;;  %v386_v49 = vld [vmem:[#allocation8 + $0x98] sm:$0xff]  ;;  %v383_v50 = vld [vmem:[#allocation8 + $0x80] sm:$0xff] }
  0x70   :  { %272 = vmatpush2.msra.mxu0 %v157_v54  ;;  %349 = vmatpush2.msra.mxu1 %v159_v55  ;;  %v385_v51 = vld [vmem:[#allocation8 + $0x90] sm:$0xff]  ;;  %v380_v52 = vld [vmem:[#allocation8 + $0x68] sm:$0xff]  ;;  %v382_v53 = vld [vmem:[#allocation8 + $0x78] sm:$0xff] }
  0x71   :  { %273 = vmatprep.subr.mxu0 %v154_v56  ;;  %350 = vmatprep.subr.mxu1 %v156_v57  ;;  %v379_v54 = vld [vmem:[#allocation8 + $0x60] sm:$0xff]  ;;  %v381_v55 = vld [vmem:[#allocation8 + $0x70] sm:$0xff]  ;;  %v376_v56 = vld [vmem:[#allocation8 + $0x48] sm:$0xff] }
  0x72   :  { %274 = vmatpush2.msra.mxu0 %v153_v58  ;;  %351 = vmatpush2.msra.mxu1 %v155_v59  ;;  %v378_v57 = vld [vmem:[#allocation8 + $0x58] sm:$0xff]  ;;  %v375_v58 = vld [vmem:[#allocation8 + $0x40] sm:$0xff]  ;;  %v377_v59 = vld [vmem:[#allocation8 + $0x50] sm:$0xff] }
  0x73   :  { %275 = vmatprep.subr.mxu0 %v150_v60  ;;  %352 = vmatprep.subr.mxu1 %v152_v61  ;;  %v372_v60 = vld [vmem:[#allocation8 + $0x28] sm:$0xff]  ;;  %v374_v61 = vld [vmem:[#allocation8 + $0x38] sm:$0xff] }
  0x74   :  { %276 = vmatpush2.msra.mxu0 %v149_v62  ;;  %277 = vmatprep.mubr.f32.mxu0 %v1252_v63  ;;  %v371_v62 = vld [vmem:[#allocation8 + $0x20] sm:$0xff] }
  0x75   :  { %353 = vmatpush2.msra.mxu1 %v151_v0  ;;  %354 = vmatprep.mubr.f32.mxu1 %v1252_v63  ;;  %v373_v0 = vld [vmem:[#allocation8 + $0x30] sm:$0xff] }
  0x76   :  { %278 = vmatmul.mubr.f32.vlgmr.msra.gmra.mxu0 %v1254_v1  ;;  %355 = vmatmul.mubr.f32.vlgmr.msra.gmra.mxu1 %v1254_v1 }
  0x77   :  { %495 = vmatprep.subr.mxu0 %v428_v2  ;;  %572 = vmatprep.subr.mxu1 %v430_v3  ;;  %v368_v2 = vld [vmem:[#allocation8 + $0x8] sm:$0xff]  ;;  %v370_v3 = vld [vmem:[#allocation8 + $0x18] sm:$0xff] }
  0x78   :  { %496 = vmatpush1.msra.mxu0 %v427_v4  ;;  %573 = vmatpush1.msra.mxu1 %v429_v5  ;;  %v367_v4 = vld [vmem:[#allocation8] sm:$0xff]  ;;  %v369_v5 = vld [vmem:[#allocation8 + $0x10] sm:$0xff] }
  0x79   :  { %497 = vmatprep.subr.mxu0 %v424_v6  ;;  %574 = vmatprep.subr.mxu1 %v426_v7  ;;  %v492_v6 = vld [vmem:[#allocation8 + $0x3e8] sm:$0xff]  ;;  %v494_v7 = vld [vmem:[#allocation8 + $0x3f8] sm:$0xff] }
  0x7a   :  { %283 = vmatprep.mubr.f32.mxu0 %v1260_v8  ;;  %360 = vmatprep.mubr.f32.mxu1 %v1260_v8 }
  0x7b   :  { %498 = vmatpush1.msra.mxu0 %v423_v9  ;;  %575 = vmatpush1.msra.mxu1 %v425_v10  ;;  %v491_v9 = vld [vmem:[#allocation8 + $0x3e0] sm:$0xff]  ;;  %v493_v10 = vld [vmem:[#allocation8 + $0x3f0] sm:$0xff] }
  0x7c   :  { %284 = vmatmul.mubr.f32.gmra.mxu0 %v1262_v11  ;;  %361 = vmatmul.mubr.f32.gmra.mxu1 %v1262_v11 }
  0x7d   :  { %499 = vmatprep.subr.mxu0 %v420_v12  ;;  %576 = vmatprep.subr.mxu1 %v422_v13  ;;  %v488_v12 = vld [vmem:[#allocation8 + $0x3c8] sm:$0xff]  ;;  %v490_v13 = vld [vmem:[#allocation8 + $0x3d8] sm:$0xff] }
  0x7e   :  { %500 = vmatpush1.msra.mxu0 %v419_v14  ;;  %577 = vmatpush1.msra.mxu1 %v421_v15  ;;  %v487_v14 = vld [vmem:[#allocation8 + $0x3c0] sm:$0xff]  ;;  %v489_v15 = vld [vmem:[#allocation8 + $0x3d0] sm:$0xff] }
  0x7f   :  { %501 = vmatprep.subr.mxu0 %v416_v16  ;;  %578 = vmatprep.subr.mxu1 %v418_v17  ;;  %v484_v16 = vld [vmem:[#allocation8 + $0x3a8] sm:$0xff]  ;;  %v486_v17 = vld [vmem:[#allocation8 + $0x3b8] sm:$0xff] }
  0x80   :  { %502 = vmatpush1.msra.mxu0 %v415_v18  ;;  %579 = vmatpush1.msra.mxu1 %v417_v19  ;;  %v483_v18 = vld [vmem:[#allocation8 + $0x3a0] sm:$0xff]  ;;  %v485_v19 = vld [vmem:[#allocation8 + $0x3b0] sm:$0xff] }
  0x81   :  { %503 = vmatprep.subr.mxu0 %v412_v20  ;;  %580 = vmatprep.subr.mxu1 %v414_v21  ;;  %v480_v20 = vld [vmem:[#allocation8 + $0x388] sm:$0xff]  ;;  %v482_v21 = vld [vmem:[#allocation8 + $0x398] sm:$0xff] }
  0x82   :  { %504 = vmatpush1.msra.mxu0 %v411_v22  ;;  %581 = vmatpush1.msra.mxu1 %v413_v23  ;;  %v479_v22 = vld [vmem:[#allocation8 + $0x380] sm:$0xff]  ;;  %v481_v23 = vld [vmem:[#allocation8 + $0x390] sm:$0xff] }
  0x83   :  { %505 = vmatprep.subr.mxu0 %v408_v24  ;;  %582 = vmatprep.subr.mxu1 %v410_v25  ;;  %v476_v24 = vld [vmem:[#allocation8 + $0x368] sm:$0xff]  ;;  %v478_v25 = vld [vmem:[#allocation8 + $0x378] sm:$0xff] }
  0x84   :  { %506 = vmatpush1.msra.mxu0 %v407_v26  ;;  %583 = vmatpush1.msra.mxu1 %v409_v27  ;;  %v475_v26 = vld [vmem:[#allocation8 + $0x360] sm:$0xff]  ;;  %v477_v27 = vld [vmem:[#allocation8 + $0x370] sm:$0xff] }
  0x85   :  { %507 = vmatprep.subr.mxu0 %v404_v28  ;;  %584 = vmatprep.subr.mxu1 %v406_v29  ;;  %v472_v28 = vld [vmem:[#allocation8 + $0x348] sm:$0xff]  ;;  %v474_v29 = vld [vmem:[#allocation8 + $0x358] sm:$0xff] }
  0x86   :  { %508 = vmatpush1.msra.mxu0 %v403_v30  ;;  %585 = vmatpush1.msra.mxu1 %v405_v31  ;;  %v471_v30 = vld [vmem:[#allocation8 + $0x340] sm:$0xff]  ;;  %v473_v31 = vld [vmem:[#allocation8 + $0x350] sm:$0xff] }
  0x87   :  { %509 = vmatprep.subr.mxu0 %v400_v32  ;;  %586 = vmatprep.subr.mxu1 %v402_v33  ;;  %v468_v32 = vld [vmem:[#allocation8 + $0x328] sm:$0xff]  ;;  %v470_v33 = vld [vmem:[#allocation8 + $0x338] sm:$0xff] }
  0x88   :  { %510 = vmatpush1.msra.mxu0 %v399_v34  ;;  %587 = vmatpush1.msra.mxu1 %v401_v35  ;;  %v467_v34 = vld [vmem:[#allocation8 + $0x320] sm:$0xff]  ;;  %v469_v35 = vld [vmem:[#allocation8 + $0x330] sm:$0xff] }
  0x89   :  { %511 = vmatprep.subr.mxu0 %v396_v36  ;;  %588 = vmatprep.subr.mxu1 %v398_v37  ;;  %v464_v36 = vld [vmem:[#allocation8 + $0x308] sm:$0xff]  ;;  %v466_v37 = vld [vmem:[#allocation8 + $0x318] sm:$0xff] }
  0x8a   :  { %512 = vmatpush1.msra.mxu0 %v395_v38  ;;  %589 = vmatpush1.msra.mxu1 %v397_v39  ;;  %v463_v38 = vld [vmem:[#allocation8 + $0x300] sm:$0xff]  ;;  %v465_v39 = vld [vmem:[#allocation8 + $0x310] sm:$0xff] }
  0x8b   :  { %513 = vmatprep.subr.mxu0 %v392_v40  ;;  %590 = vmatprep.subr.mxu1 %v394_v41  ;;  %v460_v40 = vld [vmem:[#allocation8 + $0x2e8] sm:$0xff]  ;;  %v462_v41 = vld [vmem:[#allocation8 + $0x2f8] sm:$0xff] }
  0x8c   :  { %514 = vmatpush1.msra.mxu0 %v391_v42  ;;  %591 = vmatpush1.msra.mxu1 %v393_v43  ;;  %v459_v42 = vld [vmem:[#allocation8 + $0x2e0] sm:$0xff]  ;;  %v461_v43 = vld [vmem:[#allocation8 + $0x2f0] sm:$0xff] }
  0x8d   :  { %515 = vmatprep.subr.mxu0 %v388_v44  ;;  %592 = vmatprep.subr.mxu1 %v390_v45  ;;  %v456_v44 = vld [vmem:[#allocation8 + $0x2c8] sm:$0xff]  ;;  %v458_v45 = vld [vmem:[#allocation8 + $0x2d8] sm:$0xff] }
  0x8e   :  { %516 = vmatpush1.msra.mxu0 %v387_v46  ;;  %593 = vmatpush1.msra.mxu1 %v389_v47  ;;  %v455_v46 = vld [vmem:[#allocation8 + $0x2c0] sm:$0xff]  ;;  %v457_v47 = vld [vmem:[#allocation8 + $0x2d0] sm:$0xff] }
  0x8f   :  { %517 = vmatprep.subr.mxu0 %v384_v48  ;;  %594 = vmatprep.subr.mxu1 %v386_v49  ;;  %v452_v48 = vld [vmem:[#allocation8 + $0x2a8] sm:$0xff]  ;;  %v454_v49 = vld [vmem:[#allocation8 + $0x2b8] sm:$0xff] }
  0x90   :  { %518 = vmatpush1.msra.mxu0 %v383_v50  ;;  %595 = vmatpush1.msra.mxu1 %v385_v51  ;;  %v451_v50 = vld [vmem:[#allocation8 + $0x2a0] sm:$0xff]  ;;  %v453_v51 = vld [vmem:[#allocation8 + $0x2b0] sm:$0xff] }
  0x91   :  { %519 = vmatprep.subr.mxu0 %v380_v52  ;;  %596 = vmatprep.subr.mxu1 %v382_v53  ;;  %v448_v52 = vld [vmem:[#allocation8 + $0x288] sm:$0xff]  ;;  %v450_v53 = vld [vmem:[#allocation8 + $0x298] sm:$0xff] }
  0x92   :  { %520 = vmatpush1.msra.mxu0 %v379_v54  ;;  %597 = vmatpush1.msra.mxu1 %v381_v55  ;;  %v447_v54 = vld [vmem:[#allocation8 + $0x280] sm:$0xff]  ;;  %v449_v55 = vld [vmem:[#allocation8 + $0x290] sm:$0xff] }
  0x93   :  { %521 = vmatprep.subr.mxu0 %v376_v56  ;;  %598 = vmatprep.subr.mxu1 %v378_v57  ;;  %v444_v56 = vld [vmem:[#allocation8 + $0x268] sm:$0xff]  ;;  %v446_v57 = vld [vmem:[#allocation8 + $0x278] sm:$0xff] }
  0x94   :  { %522 = vmatpush1.msra.mxu0 %v375_v58  ;;  %599 = vmatpush1.msra.mxu1 %v377_v59  ;;  %v443_v58 = vld [vmem:[#allocation8 + $0x260] sm:$0xff]  ;;  %v445_v59 = vld [vmem:[#allocation8 + $0x270] sm:$0xff] }
  0x95   :  { %523 = vmatprep.subr.mxu0 %v372_v60  ;;  %600 = vmatprep.subr.mxu1 %v374_v61  ;;  %v440_v60 = vld [vmem:[#allocation8 + $0x248] sm:$0xff]  ;;  %v442_v61 = vld [vmem:[#allocation8 + $0x258] sm:$0xff] }
  0x96   :  { %524 = vmatpush1.msra.mxu0 %v371_v62  ;;  %601 = vmatpush1.msra.mxu1 %v373_v0  ;;  %v439_v62 = vld [vmem:[#allocation8 + $0x240] sm:$0xff]  ;;  %v441_v0 = vld [vmem:[#allocation8 + $0x250] sm:$0xff] }
  0x97   :  { %525 = vmatprep.subr.mxu0 %v368_v2  ;;  %602 = vmatprep.subr.mxu1 %v370_v3  ;;  %v436_v2 = vld [vmem:[#allocation8 + $0x228] sm:$0xff]  ;;  %v438_v3 = vld [vmem:[#allocation8 + $0x238] sm:$0xff] }
  0x98   :  { %526 = vmatpush1.msra.mxu0 %v367_v4  ;;  %603 = vmatpush1.msra.mxu1 %v369_v5  ;;  %v435_v4 = vld [vmem:[#allocation8 + $0x220] sm:$0xff]  ;;  %v437_v5 = vld [vmem:[#allocation8 + $0x230] sm:$0xff] }
  0x99   :  { %527 = vmatprep.subr.mxu0 %v492_v6  ;;  %604 = vmatprep.subr.mxu1 %v494_v7  ;;  %v432_v6 = vld [vmem:[#allocation8 + $0x208] sm:$0xff]  ;;  %v434_v7 = vld [vmem:[#allocation8 + $0x218] sm:$0xff] }
  0x9a   :  { %528 = vmatpush2.msra.mxu0 %v491_v9  ;;  %605 = vmatpush2.msra.mxu1 %v493_v10  ;;  %v431_v9 = vld [vmem:[#allocation8 + $0x200] sm:$0xff]  ;;  %v433_v10 = vld [vmem:[#allocation8 + $0x210] sm:$0xff] }
  0x9b   :  { %529 = vmatprep.subr.mxu0 %v488_v12  ;;  %606 = vmatprep.subr.mxu1 %v490_v13  ;;  %v748_v12 = vld [vmem:[#allocation9 + $0xf8] sm:$0xff] }
  0x9c   :  { %530 = vmatpush2.msra.mxu0 %v487_v14  ;;  %607 = vmatpush2.msra.mxu1 %v489_v15  ;;  %v812_v13 = vld [vmem:[#allocation9 + $0x2f8] sm:$0xff]  ;;  %v747_v14 = vld [vmem:[#allocation9 + $0xf0] sm:$0xff] }
  0x9d   :  { %531 = vmatprep.subr.mxu0 %v484_v16  ;;  %608 = vmatprep.subr.mxu1 %v486_v17  ;;  %v811_v15 = vld [vmem:[#allocation9 + $0x2f0] sm:$0xff]  ;;  %v810_v16 = vld [vmem:[#allocation9 + $0x2e8] sm:$0xff]  ;;  %v809_v17 = vld [vmem:[#allocation9 + $0x2e0] sm:$0xff] }
  0x9e   :  { %532 = vmatpush2.msra.mxu0 %v483_v18  ;;  %609 = vmatpush2.msra.mxu1 %v485_v19  ;;  %v808_v18 = vld [vmem:[#allocation9 + $0x2d8] sm:$0xff]  ;;  %v807_v19 = vld [vmem:[#allocation9 + $0x2d0] sm:$0xff] }
  0x9f   :  { %533 = vmatprep.subr.mxu0 %v480_v20  ;;  %610 = vmatprep.subr.mxu1 %v482_v21  ;;  %v742_v20 = vld [vmem:[#allocation9 + $0xc8] sm:$0xff] }
  0xa0   :  { %534 = vmatpush2.msra.mxu0 %v479_v22  ;;  %611 = vmatpush2.msra.mxu1 %v481_v23  ;;  %v806_v21 = vld [vmem:[#allocation9 + $0x2c8] sm:$0xff]  ;;  %v741_v22 = vld [vmem:[#allocation9 + $0xc0] sm:$0xff] }
  0xa1   :  { %535 = vmatprep.subr.mxu0 %v476_v24  ;;  %612 = vmatprep.subr.mxu1 %v478_v25  ;;  %v805_v23 = vld [vmem:[#allocation9 + $0x2c0] sm:$0xff]  ;;  %v740_v24 = vld [vmem:[#allocation9 + $0xb8] sm:$0xff] }
  0xa2   :  { %536 = vmatpush2.msra.mxu0 %v475_v26  ;;  %613 = vmatpush2.msra.mxu1 %v477_v27  ;;  %v804_v25 = vld [vmem:[#allocation9 + $0x2b8] sm:$0xff]  ;;  %v739_v26 = vld [vmem:[#allocation9 + $0xb0] sm:$0xff] }
  0xa3   :  { %537 = vmatprep.subr.mxu0 %v472_v28  ;;  %614 = vmatprep.subr.mxu1 %v474_v29  ;;  %v803_v27 = vld [vmem:[#allocation9 + $0x2b0] sm:$0xff]  ;;  %v738_v28 = vld [vmem:[#allocation9 + $0xa8] sm:$0xff] }
  0xa4   :  { %538 = vmatpush2.msra.mxu0 %v471_v30  ;;  %615 = vmatpush2.msra.mxu1 %v473_v31  ;;  %v802_v29 = vld [vmem:[#allocation9 + $0x2a8] sm:$0xff]  ;;  %v737_v30 = vld [vmem:[#allocation9 + $0xa0] sm:$0xff] }
  0xa5   :  { %539 = vmatprep.subr.mxu0 %v468_v32  ;;  %616 = vmatprep.subr.mxu1 %v470_v33  ;;  %v801_v31 = vld [vmem:[#allocation9 + $0x2a0] sm:$0xff]  ;;  %v736_v32 = vld [vmem:[#allocation9 + $0x98] sm:$0xff] }
  0xa6   :  { %540 = vmatpush2.msra.mxu0 %v467_v34  ;;  %617 = vmatpush2.msra.mxu1 %v469_v35  ;;  %v800_v33 = vld [vmem:[#allocation9 + $0x298] sm:$0xff]  ;;  %v735_v34 = vld [vmem:[#allocation9 + $0x90] sm:$0xff] }
  0xa7   :  { %541 = vmatprep.subr.mxu0 %v464_v36  ;;  %618 = vmatprep.subr.mxu1 %v466_v37  ;;  %v799_v35 = vld [vmem:[#allocation9 + $0x290] sm:$0xff]  ;;  %v734_v36 = vld [vmem:[#allocation9 + $0x88] sm:$0xff] }
  0xa8   :  { %542 = vmatpush2.msra.mxu0 %v463_v38  ;;  %619 = vmatpush2.msra.mxu1 %v465_v39  ;;  %v798_v37 = vld [vmem:[#allocation9 + $0x288] sm:$0xff]  ;;  %v733_v38 = vld [vmem:[#allocation9 + $0x80] sm:$0xff] }
  0xa9   :  { %543 = vmatprep.subr.mxu0 %v460_v40  ;;  %620 = vmatprep.subr.mxu1 %v462_v41  ;;  %v797_v39 = vld [vmem:[#allocation9 + $0x280] sm:$0xff]  ;;  %v732_v40 = vld [vmem:[#allocation9 + $0x78] sm:$0xff] }
  0xaa   :  { %544 = vmatpush2.msra.mxu0 %v459_v42  ;;  %621 = vmatpush2.msra.mxu1 %v461_v43  ;;  %v796_v41 = vld [vmem:[#allocation9 + $0x278] sm:$0xff]  ;;  %v731_v42 = vld [vmem:[#allocation9 + $0x70] sm:$0xff] }
  0xab   :  { %545 = vmatprep.subr.mxu0 %v456_v44  ;;  %622 = vmatprep.subr.mxu1 %v458_v45  ;;  %v795_v43 = vld [vmem:[#allocation9 + $0x270] sm:$0xff]  ;;  %v730_v44 = vld [vmem:[#allocation9 + $0x68] sm:$0xff] }
  0xac   :  { %546 = vmatpush2.msra.mxu0 %v455_v46  ;;  %623 = vmatpush2.msra.mxu1 %v457_v47  ;;  %v794_v45 = vld [vmem:[#allocation9 + $0x268] sm:$0xff]  ;;  %v729_v46 = vld [vmem:[#allocation9 + $0x60] sm:$0xff] }
  0xad   :  { %547 = vmatprep.subr.mxu0 %v452_v48  ;;  %624 = vmatprep.subr.mxu1 %v454_v49  ;;  %v793_v47 = vld [vmem:[#allocation9 + $0x260] sm:$0xff]  ;;  %v728_v48 = vld [vmem:[#allocation9 + $0x58] sm:$0xff] }
  0xae   :  { %548 = vmatpush2.msra.mxu0 %v451_v50  ;;  %625 = vmatpush2.msra.mxu1 %v453_v51  ;;  %v792_v49 = vld [vmem:[#allocation9 + $0x258] sm:$0xff]  ;;  %v727_v50 = vld [vmem:[#allocation9 + $0x50] sm:$0xff] }
  0xaf   :  { %549 = vmatprep.subr.mxu0 %v448_v52  ;;  %626 = vmatprep.subr.mxu1 %v450_v53  ;;  %v791_v51 = vld [vmem:[#allocation9 + $0x250] sm:$0xff]  ;;  %v726_v52 = vld [vmem:[#allocation9 + $0x48] sm:$0xff] }
  0xb0   :  { %550 = vmatpush2.msra.mxu0 %v447_v54  ;;  %627 = vmatpush2.msra.mxu1 %v449_v55  ;;  %v790_v53 = vld [vmem:[#allocation9 + $0x248] sm:$0xff]  ;;  %v725_v54 = vld [vmem:[#allocation9 + $0x40] sm:$0xff] }
  0xb1   :  { %551 = vmatprep.subr.mxu0 %v444_v56  ;;  %628 = vmatprep.subr.mxu1 %v446_v57  ;;  %v789_v55 = vld [vmem:[#allocation9 + $0x240] sm:$0xff]  ;;  %v724_v56 = vld [vmem:[#allocation9 + $0x38] sm:$0xff] }
  0xb2   :  { %552 = vmatpush2.msra.mxu0 %v443_v58  ;;  %629 = vmatpush2.msra.mxu1 %v445_v59  ;;  %v788_v57 = vld [vmem:[#allocation9 + $0x238] sm:$0xff]  ;;  %v723_v58 = vld [vmem:[#allocation9 + $0x30] sm:$0xff] }
  0xb3   :  { %553 = vmatprep.subr.mxu0 %v440_v60  ;;  %630 = vmatprep.subr.mxu1 %v442_v61  ;;  %v787_v59 = vld [vmem:[#allocation9 + $0x230] sm:$0xff]  ;;  %v722_v60 = vld [vmem:[#allocation9 + $0x28] sm:$0xff] }
  0xb4   :  { %554 = vmatpush2.msra.mxu0 %v439_v62  ;;  %631 = vmatpush2.msra.mxu1 %v441_v0  ;;  %v786_v61 = vld [vmem:[#allocation9 + $0x228] sm:$0xff]  ;;  %v721_v62 = vld [vmem:[#allocation9 + $0x20] sm:$0xff] }
  0xb5   :  { %555 = vmatprep.subr.mxu0 %v436_v2  ;;  %632 = vmatprep.subr.mxu1 %v438_v3  ;;  %v785_v0 = vld [vmem:[#allocation9 + $0x220] sm:$0xff]  ;;  %v720_v2 = vld [vmem:[#allocation9 + $0x18] sm:$0xff] }
  0xb6   :  { %556 = vmatpush2.msra.mxu0 %v435_v4  ;;  %633 = vmatpush2.msra.mxu1 %v437_v5  ;;  %v784_v3 = vld [vmem:[#allocation9 + $0x218] sm:$0xff]  ;;  %v719_v4 = vld [vmem:[#allocation9 + $0x10] sm:$0xff] }
  0xb7   :  { %557 = vmatprep.subr.mxu0 %v432_v6  ;;  %634 = vmatprep.subr.mxu1 %v434_v7  ;;  %v783_v5 = vld [vmem:[#allocation9 + $0x210] sm:$0xff]  ;;  %v718_v6 = vld [vmem:[#allocation9 + $0x8] sm:$0xff] }
  0xb8   :  { %558 = vmatpush2.msra.mxu0 %v431_v9  ;;  %559 = vmatprep.mubr.f32.mxu0 %v1252_v63  ;;  %v782_v7 = vld [vmem:[#allocation9 + $0x208] sm:$0xff]  ;;  %v717_v9 = vld [vmem:[#allocation9] sm:$0xff] }
  0xb9   :  { %635 = vmatpush2.msra.mxu1 %v433_v10  ;;  %636 = vmatprep.mubr.f32.mxu1 %v1252_v63  ;;  %v746_v63 = vld [vmem:[#allocation9 + $0xe8] sm:$0xff]  ;;  %v781_v10 = vld [vmem:[#allocation9 + $0x200] sm:$0xff] }
  0xba   :  { %560 = vmatmul.mubr.f32.vlgmr.msra.gmra.mxu0 %v1254_v1  ;;  %637 = vmatmul.mubr.f32.vlgmr.msra.gmra.mxu1 %v1254_v1  ;;  %v745_v1 = vld [vmem:[#allocation9 + $0xe0] sm:$0xff] }
  0xbb   :  { %565 = vmatprep.mubr.f32.mxu0 %v1260_v8  ;;  %642 = vmatprep.mubr.f32.mxu1 %v1260_v8  ;;  %v744_v8 = vld [vmem:[#allocation9 + $0xd8] sm:$0xff] }
  0xbc   :  { %845 = vmatprep.subr.mxu0 %v748_v12  ;;  %922 = vmatprep.subr.mxu1 %v812_v13  ;;  %v780_v12 = vld [vmem:[#allocation9 + $0x1f8] sm:$0xff] }
  0xbd   :  { %846 = vmatpush1.msra.mxu0 %v747_v14  ;;  %923 = vmatpush1.msra.mxu1 %v811_v15  ;;  %v844_v13 = vld [vmem:[#allocation9 + $0x3f8] sm:$0xff]  ;;  %v779_v14 = vld [vmem:[#allocation9 + $0x1f0] sm:$0xff] }
  0xbe   :  { %566 = vmatmul.mubr.f32.gmra.mxu0 %v1262_v11  ;;  %643 = vmatmul.mubr.f32.gmra.mxu1 %v1262_v11  ;;  %v743_v11 = vld [vmem:[#allocation9 + $0xd0] sm:$0xff] }
  0xbf   :  { %847 = vmatprep.subr.mxu0 %v746_v63  ;;  %924 = vmatprep.subr.mxu1 %v810_v16  ;;  %v843_v15 = vld [vmem:[#allocation9 + $0x3f0] sm:$0xff]  ;;  %v778_v63 = vld [vmem:[#allocation9 + $0x1e8] sm:$0xff] }
  0xc0   :  { %848 = vmatpush1.msra.mxu0 %v745_v1  ;;  %925 = vmatpush1.msra.mxu1 %v809_v17  ;;  %v842_v16 = vld [vmem:[#allocation9 + $0x3e8] sm:$0xff]  ;;  %v777_v1 = vld [vmem:[#allocation9 + $0x1e0] sm:$0xff] }
  0xc1   :  { %849 = vmatprep.subr.mxu0 %v744_v8  ;;  %926 = vmatprep.subr.mxu1 %v808_v18  ;;  %v841_v17 = vld [vmem:[#allocation9 + $0x3e0] sm:$0xff]  ;;  %v776_v8 = vld [vmem:[#allocation9 + $0x1d8] sm:$0xff] }
  0xc2   :  { %850 = vmatpush1.msra.mxu0 %v743_v11  ;;  %927 = vmatpush1.msra.mxu1 %v807_v19  ;;  %v840_v18 = vld [vmem:[#allocation9 + $0x3d8] sm:$0xff]  ;;  %v775_v11 = vld [vmem:[#allocation9 + $0x1d0] sm:$0xff] }
  0xc3   :  { %851 = vmatprep.subr.mxu0 %v742_v20  ;;  %928 = vmatprep.subr.mxu1 %v806_v21  ;;  %v839_v19 = vld [vmem:[#allocation9 + $0x3d0] sm:$0xff]  ;;  %v774_v20 = vld [vmem:[#allocation9 + $0x1c8] sm:$0xff] }
  0xc4   :  { %852 = vmatpush1.msra.mxu0 %v741_v22  ;;  %929 = vmatpush1.msra.mxu1 %v805_v23  ;;  %v838_v21 = vld [vmem:[#allocation9 + $0x3c8] sm:$0xff]  ;;  %v773_v22 = vld [vmem:[#allocation9 + $0x1c0] sm:$0xff] }
  0xc5   :  { %853 = vmatprep.subr.mxu0 %v740_v24  ;;  %930 = vmatprep.subr.mxu1 %v804_v25  ;;  %v837_v23 = vld [vmem:[#allocation9 + $0x3c0] sm:$0xff]  ;;  %v772_v24 = vld [vmem:[#allocation9 + $0x1b8] sm:$0xff] }
  0xc6   :  { %854 = vmatpush1.msra.mxu0 %v739_v26  ;;  %931 = vmatpush1.msra.mxu1 %v803_v27  ;;  %v836_v25 = vld [vmem:[#allocation9 + $0x3b8] sm:$0xff]  ;;  %v771_v26 = vld [vmem:[#allocation9 + $0x1b0] sm:$0xff] }
  0xc7   :  { %855 = vmatprep.subr.mxu0 %v738_v28  ;;  %932 = vmatprep.subr.mxu1 %v802_v29  ;;  %v835_v27 = vld [vmem:[#allocation9 + $0x3b0] sm:$0xff]  ;;  %v770_v28 = vld [vmem:[#allocation9 + $0x1a8] sm:$0xff] }
  0xc8   :  { %856 = vmatpush1.msra.mxu0 %v737_v30  ;;  %933 = vmatpush1.msra.mxu1 %v801_v31  ;;  %v834_v29 = vld [vmem:[#allocation9 + $0x3a8] sm:$0xff]  ;;  %v769_v30 = vld [vmem:[#allocation9 + $0x1a0] sm:$0xff] }
  0xc9   :  { %857 = vmatprep.subr.mxu0 %v736_v32  ;;  %934 = vmatprep.subr.mxu1 %v800_v33  ;;  %v833_v31 = vld [vmem:[#allocation9 + $0x3a0] sm:$0xff]  ;;  %v768_v32 = vld [vmem:[#allocation9 + $0x198] sm:$0xff] }
  0xca   :  { %858 = vmatpush1.msra.mxu0 %v735_v34  ;;  %935 = vmatpush1.msra.mxu1 %v799_v35  ;;  %v832_v33 = vld [vmem:[#allocation9 + $0x398] sm:$0xff]  ;;  %v767_v34 = vld [vmem:[#allocation9 + $0x190] sm:$0xff] }
  0xcb   :  { %859 = vmatprep.subr.mxu0 %v734_v36  ;;  %936 = vmatprep.subr.mxu1 %v798_v37  ;;  %v831_v35 = vld [vmem:[#allocation9 + $0x390] sm:$0xff]  ;;  %v766_v36 = vld [vmem:[#allocation9 + $0x188] sm:$0xff] }
  0xcc   :  { %860 = vmatpush1.msra.mxu0 %v733_v38  ;;  %937 = vmatpush1.msra.mxu1 %v797_v39  ;;  %v830_v37 = vld [vmem:[#allocation9 + $0x388] sm:$0xff]  ;;  %v765_v38 = vld [vmem:[#allocation9 + $0x180] sm:$0xff] }
  0xcd   :  { %861 = vmatprep.subr.mxu0 %v732_v40  ;;  %938 = vmatprep.subr.mxu1 %v796_v41  ;;  %v829_v39 = vld [vmem:[#allocation9 + $0x380] sm:$0xff]  ;;  %v764_v40 = vld [vmem:[#allocation9 + $0x178] sm:$0xff] }
  0xce   :  { %862 = vmatpush1.msra.mxu0 %v731_v42  ;;  %939 = vmatpush1.msra.mxu1 %v795_v43  ;;  %v828_v41 = vld [vmem:[#allocation9 + $0x378] sm:$0xff]  ;;  %v763_v42 = vld [vmem:[#allocation9 + $0x170] sm:$0xff] }
  0xcf   :  { %863 = vmatprep.subr.mxu0 %v730_v44  ;;  %940 = vmatprep.subr.mxu1 %v794_v45  ;;  %v827_v43 = vld [vmem:[#allocation9 + $0x370] sm:$0xff]  ;;  %v762_v44 = vld [vmem:[#allocation9 + $0x168] sm:$0xff] }
  0xd0   :  { %864 = vmatpush1.msra.mxu0 %v729_v46  ;;  %941 = vmatpush1.msra.mxu1 %v793_v47  ;;  %v826_v45 = vld [vmem:[#allocation9 + $0x368] sm:$0xff]  ;;  %v761_v46 = vld [vmem:[#allocation9 + $0x160] sm:$0xff] }
  0xd1   :  { %865 = vmatprep.subr.mxu0 %v728_v48  ;;  %942 = vmatprep.subr.mxu1 %v792_v49  ;;  %v825_v47 = vld [vmem:[#allocation9 + $0x360] sm:$0xff]  ;;  %v760_v48 = vld [vmem:[#allocation9 + $0x158] sm:$0xff] }
  0xd2   :  { %866 = vmatpush1.msra.mxu0 %v727_v50  ;;  %943 = vmatpush1.msra.mxu1 %v791_v51  ;;  %v824_v49 = vld [vmem:[#allocation9 + $0x358] sm:$0xff]  ;;  %v759_v50 = vld [vmem:[#allocation9 + $0x150] sm:$0xff] }
  0xd3   :  { %867 = vmatprep.subr.mxu0 %v726_v52  ;;  %944 = vmatprep.subr.mxu1 %v790_v53  ;;  %v823_v51 = vld [vmem:[#allocation9 + $0x350] sm:$0xff]  ;;  %v758_v52 = vld [vmem:[#allocation9 + $0x148] sm:$0xff] }
  0xd4   :  { %868 = vmatpush1.msra.mxu0 %v725_v54  ;;  %945 = vmatpush1.msra.mxu1 %v789_v55  ;;  %v822_v53 = vld [vmem:[#allocation9 + $0x348] sm:$0xff]  ;;  %v757_v54 = vld [vmem:[#allocation9 + $0x140] sm:$0xff] }
  0xd5   :  { %869 = vmatprep.subr.mxu0 %v724_v56  ;;  %946 = vmatprep.subr.mxu1 %v788_v57  ;;  %v821_v55 = vld [vmem:[#allocation9 + $0x340] sm:$0xff]  ;;  %v756_v56 = vld [vmem:[#allocation9 + $0x138] sm:$0xff] }
  0xd6   :  { %870 = vmatpush1.msra.mxu0 %v723_v58  ;;  %947 = vmatpush1.msra.mxu1 %v787_v59  ;;  %v820_v57 = vld [vmem:[#allocation9 + $0x338] sm:$0xff]  ;;  %v755_v58 = vld [vmem:[#allocation9 + $0x130] sm:$0xff] }
  0xd7   :  { %871 = vmatprep.subr.mxu0 %v722_v60  ;;  %948 = vmatprep.subr.mxu1 %v786_v61  ;;  %v819_v59 = vld [vmem:[#allocation9 + $0x330] sm:$0xff]  ;;  %v754_v60 = vld [vmem:[#allocation9 + $0x128] sm:$0xff] }
  0xd8   :  { %872 = vmatpush1.msra.mxu0 %v721_v62  ;;  %949 = vmatpush1.msra.mxu1 %v785_v0  ;;  %v818_v61 = vld [vmem:[#allocation9 + $0x328] sm:$0xff]  ;;  %v753_v62 = vld [vmem:[#allocation9 + $0x120] sm:$0xff] }
  0xd9   :  { %873 = vmatprep.subr.mxu0 %v720_v2  ;;  %950 = vmatprep.subr.mxu1 %v784_v3  ;;  %v817_v0 = vld [vmem:[#allocation9 + $0x320] sm:$0xff]  ;;  %v752_v2 = vld [vmem:[#allocation9 + $0x118] sm:$0xff] }
  0xda   :  { %874 = vmatpush1.msra.mxu0 %v719_v4  ;;  %951 = vmatpush1.msra.mxu1 %v783_v5  ;;  %v816_v3 = vld [vmem:[#allocation9 + $0x318] sm:$0xff]  ;;  %v751_v4 = vld [vmem:[#allocation9 + $0x110] sm:$0xff] }
  0xdb   :  { %875 = vmatprep.subr.mxu0 %v718_v6  ;;  %952 = vmatprep.subr.mxu1 %v782_v7  ;;  %v815_v5 = vld [vmem:[#allocation9 + $0x310] sm:$0xff]  ;;  %v750_v6 = vld [vmem:[#allocation9 + $0x108] sm:$0xff] }
  0xdc   :  { %876 = vmatpush1.msra.mxu0 %v717_v9  ;;  %953 = vmatpush1.msra.mxu1 %v781_v10  ;;  %v814_v7 = vld [vmem:[#allocation9 + $0x308] sm:$0xff]  ;;  %v749_v9 = vld [vmem:[#allocation9 + $0x100] sm:$0xff] }
  0xdd   :  { %877 = vmatprep.subr.mxu0 %v780_v12  ;;  %954 = vmatprep.subr.mxu1 %v844_v13  ;;  %v813_v10 = vld [vmem:[#allocation9 + $0x300] sm:$0xff] }
  0xde   :  { %878 = vmatpush2.msra.mxu0 %v779_v14  ;;  %955 = vmatpush2.msra.mxu1 %v843_v15 }
  0xdf   :  { %879 = vmatprep.subr.mxu0 %v778_v63  ;;  %956 = vmatprep.subr.mxu1 %v842_v16 }
  0xe0   :  { %880 = vmatpush2.msra.mxu0 %v777_v1  ;;  %957 = vmatpush2.msra.mxu1 %v841_v17 }
  0xe1   :  { %881 = vmatprep.subr.mxu0 %v776_v8  ;;  %958 = vmatprep.subr.mxu1 %v840_v18 }
  0xe2   :  { %882 = vmatpush2.msra.mxu0 %v775_v11  ;;  %959 = vmatpush2.msra.mxu1 %v839_v19 }
  0xe3   :  { %883 = vmatprep.subr.mxu0 %v774_v20  ;;  %960 = vmatprep.subr.mxu1 %v838_v21 }
  0xe4   :  { %884 = vmatpush2.msra.mxu0 %v773_v22  ;;  %961 = vmatpush2.msra.mxu1 %v837_v23 }
  0xe5   :  { %885 = vmatprep.subr.mxu0 %v772_v24  ;;  %962 = vmatprep.subr.mxu1 %v836_v25 }
  0xe6   :  { %886 = vmatpush2.msra.mxu0 %v771_v26  ;;  %963 = vmatpush2.msra.mxu1 %v835_v27 }
  0xe7   :  { %887 = vmatprep.subr.mxu0 %v770_v28  ;;  %964 = vmatprep.subr.mxu1 %v834_v29 }
  0xe8   :  { %888 = vmatpush2.msra.mxu0 %v769_v30  ;;  %965 = vmatpush2.msra.mxu1 %v833_v31 }
  0xe9   :  { %889 = vmatprep.subr.mxu0 %v768_v32  ;;  %966 = vmatprep.subr.mxu1 %v832_v33 }
  0xea   :  { %890 = vmatpush2.msra.mxu0 %v767_v34  ;;  %967 = vmatpush2.msra.mxu1 %v831_v35 }
  0xeb   :  { %891 = vmatprep.subr.mxu0 %v766_v36  ;;  %968 = vmatprep.subr.mxu1 %v830_v37 }
  0xec   :  { %892 = vmatpush2.msra.mxu0 %v765_v38  ;;  %969 = vmatpush2.msra.mxu1 %v829_v39 }
  0xed   :  { %893 = vmatprep.subr.mxu0 %v764_v40  ;;  %970 = vmatprep.subr.mxu1 %v828_v41 }
  0xee   :  { %894 = vmatpush2.msra.mxu0 %v763_v42  ;;  %971 = vmatpush2.msra.mxu1 %v827_v43 }
  0xef   :  { %895 = vmatprep.subr.mxu0 %v762_v44  ;;  %972 = vmatprep.subr.mxu1 %v826_v45 }
  0xf0   :  { %896 = vmatpush2.msra.mxu0 %v761_v46  ;;  %973 = vmatpush2.msra.mxu1 %v825_v47 }
  0xf1   :  { %897 = vmatprep.subr.mxu0 %v760_v48  ;;  %974 = vmatprep.subr.mxu1 %v824_v49 }
  0xf2   :  { %898 = vmatpush2.msra.mxu0 %v759_v50  ;;  %975 = vmatpush2.msra.mxu1 %v823_v51 }
  0xf3   :  { %899 = vmatprep.subr.mxu0 %v758_v52  ;;  %976 = vmatprep.subr.mxu1 %v822_v53 }
  0xf4   :  { %900 = vmatpush2.msra.mxu0 %v757_v54  ;;  %977 = vmatpush2.msra.mxu1 %v821_v55 }
  0xf5   :  { %901 = vmatprep.subr.mxu0 %v756_v56  ;;  %978 = vmatprep.subr.mxu1 %v820_v57 }
  0xf6   :  { %902 = vmatpush2.msra.mxu0 %v755_v58  ;;  %979 = vmatpush2.msra.mxu1 %v819_v59 }
  0xf7   :  { %903 = vmatprep.subr.mxu0 %v754_v60  ;;  %980 = vmatprep.subr.mxu1 %v818_v61 }
  0xf8   :  { %904 = vmatpush2.msra.mxu0 %v753_v62  ;;  %981 = vmatpush2.msra.mxu1 %v817_v0 }
  0xf9   :  { %905 = vmatprep.subr.mxu0 %v752_v2  ;;  %982 = vmatprep.subr.mxu1 %v816_v3 }
  0xfa   :  { %906 = vmatpush2.msra.mxu0 %v751_v4  ;;  %983 = vmatpush2.msra.mxu1 %v815_v5 }
  0xfb   :  { %907 = vmatprep.subr.mxu0 %v750_v6  ;;  %984 = vmatprep.subr.mxu1 %v814_v7 }
  0xfc   :  { %908 = vmatpush2.msra.mxu0 %v749_v9  ;;  %985 = vmatpush2.msra.mxu1 %v813_v10 }
 0x136   :  { %v279_v12 = vpop.f32.mrf.mxu0  ;;  %v356_v13 = vpop.f32.mrf.mxu1 }
 0x137   :  { %v1037_v1 = vmul.f32 -1.442695, %v279_v12  ;;  %v1039_v11 = vmul.f32 -1.442695, %v356_v13 }
 0x138   :  { %v281_v14 = vpop.f32.mrf.mxu0  ;;  %v358_v15 = vpop.f32.mrf.mxu1 }
 0x139   :  { %v1038_v17 = vmul.f32 -1.442695, %v281_v14  ;;  %v1040_v8 = vmul.f32 -1.442695, %v358_v15  ;;  %1054 = vpow2.f32 %v1037_v1 }
 0x13b   :  { %1056 = vpow2.f32 %v1038_v17 }
 0x13c   :  { %v1276_v63 = vpop.f32.mrf.mxu0  ;;  %v1278_v16 = vpop.f32.mrf.mxu1  ;;  %1058 = vpow2.f32 %v1040_v8 }
 0x13d   :  { %v1041_v20 = vmul.f32 -1.442695, %v1276_v63  ;;  %1060 = vpow2.f32 %v1039_v11  ;;  %v1043_v23 = vmul.f32 -1.442695, %v1278_v16 }
 0x13e   :  { %v287_v18 = vpop.f32.mrf.mxu0  ;;  %v364_v19 = vpop.f32.mrf.mxu1 }
 0x13f   :  { %v1042_v21 = vmul.f32 -1.442695, %v287_v18  ;;  %v1044_v22 = vmul.f32 -1.442695, %v364_v19  ;;  %1062 = vpow2.f32 %v1041_v20 }
 0x141   :  { %1064 = vpow2.f32 %v1042_v21 }
 0x142   :  { %1066 = vpow2.f32 %v1044_v22 }
 0x143   :  { %1068 = vpow2.f32 %v1043_v23 }
 0x146   :  { %v1055_v24 = vpop.eup %1054 }
 0x147   :  { %v673_v28 = vadd.f32 1.0, %v1055_v24 }
 0x148   :  { %v1057_v25 = vpop.eup %1056 }
 0x149   :  { %v1059_v26 = vpop.eup %1058  ;;  %v674_v30 = vadd.f32 1.0, %v1057_v25  ;;  %1070 = vrcp.f32 %v673_v28 }
 0x14a   :  { %v1061_v27 = vpop.eup %1060  ;;  %v676_v32 = vadd.f32 1.0, %v1059_v26 }
 0x14b   :  { %v675_v34 = vadd.f32 1.0, %v1061_v27  ;;  %1072 = vrcp.f32 %v674_v30 }
 0x14c   :  { %v1063_v29 = vpop.eup %1062  ;;  %1074 = vrcp.f32 %v676_v32 }
 0x14d   :  { %v677_v36 = vadd.f32 1.0, %v1063_v29  ;;  %1076 = vrcp.f32 %v675_v34 }
 0x14e   :  { %v1065_v31 = vpop.eup %1064 }
 0x14f   :  { %v1067_v33 = vpop.eup %1066  ;;  %v678_v37 = vadd.f32 1.0, %v1065_v31  ;;  %1078 = vrcp.f32 %v677_v36 }
 0x150   :  { %v1069_v35 = vpop.eup %1068  ;;  %v680_v38 = vadd.f32 1.0, %v1067_v33 }
 0x151   :  { %v679_v39 = vadd.f32 1.0, %v1069_v35  ;;  %1080 = vrcp.f32 %v678_v37 }
 0x152   :  { %1082 = vrcp.f32 %v680_v38 }
 0x153   :  { %1084 = vrcp.f32 %v679_v39 }
 0x156   :  { %v1071_v40 = vpop.eup %1070 }
 0x157   :  { %v697_v51 = vmul.f32 %v1071_v40, %v279_v12 }
 0x158   :  { %v1073_v41 = vpop.eup %1072 }
 0x159   :  { %v1075_v42 = vpop.eup %1074  ;;  %v698_v48 = vmul.f32 %v1073_v41, %v281_v14 }
 0x15a   :  { %v1077_v43 = vpop.eup %1076  ;;  %v700_v49 = vmul.f32 %v1075_v42, %v358_v15 }
 0x15b   :  { %v699_v52 = vmul.f32 %v1077_v43, %v356_v13 }
 0x15c   :  { %v1079_v44 = vpop.eup %1078 }
 0x15d   :  { %v701_v2 = vmul.f32 %v1079_v44, %v1276_v63 }
 0x15e   :  { %v1081_v47 = vpop.eup %1080 }
 0x15f   :  { %v1083_v50 = vpop.eup %1082  ;;  %v702_v62 = vmul.f32 %v1081_v47, %v287_v18 }
 0x160   :  { %v1085_v55 = vpop.eup %1084  ;;  %v704_v0 = vmul.f32 %v1083_v50, %v364_v19 }
 0x161   :  { %v703_v3 = vmul.f32 %v1085_v55, %v1278_v16 }
 0x17a   :  { %v561_v45 = vpop.f32.mrf.mxu0  ;;  %v638_v46 = vpop.f32.mrf.mxu1 }
 0x17b   :  { %v705_v58 = vmul.f32 %v697_v51, %v561_v45  ;;  %v707_v59 = vmul.f32 %v699_v52, %v638_v46 }
 0x17c   :  { %v563_v53 = vpop.f32.mrf.mxu0  ;;  %v640_v54 = vpop.f32.mrf.mxu1 }
 0x17d   :  { %v706_v56 = vmul.f32 %v698_v48, %v563_v53  ;;  %v708_v57 = vmul.f32 %v700_v49, %v640_v54 }
 0x17e   :  { %v567_v60 = vpop.f32.mrf.mxu0  ;;  %v644_v61 = vpop.f32.mrf.mxu1 }
 0x17f   :  { %909 = vmatprep.mubr.f32.mxu0 %v706_v56  ;;  %986 = vmatprep.mubr.f32.mxu1 %v708_v57  ;;  %v709_v9 = vmul.f32 %v701_v2, %v567_v60  ;;  %v711_v10 = vmul.f32 %v703_v3, %v644_v61 }
 0x180   :  { %v569_v4 = vpop.f32.mrf.mxu0  ;;  %v646_v5 = vpop.f32.mrf.mxu1  ;;  %910 = vmatmul.mubr.f32.vlgmr.msra.gmra.mxu0 %v705_v58  ;;  %987 = vmatmul.mubr.f32.vlgmr.msra.gmra.mxu1 %v707_v59 }
 0x181   :  { %v710_v6 = vmul.f32 %v702_v62, %v569_v4  ;;  %v712_v7 = vmul.f32 %v704_v0, %v646_v5 }
 0x183   :  { %915 = vmatprep.mubr.f32.mxu0 %v710_v6  ;;  %992 = vmatprep.mubr.f32.mxu1 %v712_v7 }
 0x184   :  { %916 = vmatmul.mubr.f32.gmra.mxu0 %v709_v9  ;;  %993 = vmatmul.mubr.f32.gmra.mxu1 %v711_v10 }
 0x240   :  { %v911_v12 = vpop.f32.mrf.mxu0  ;;  %v988_v13 = vpop.f32.mrf.mxu1 }
 0x241   :  { %v989_v14 = vadd.f32 %v988_v13, %v911_v12 }
 0x242   :  { %v913_v15 = vpop.f32.mrf.mxu0  ;;  %v990_v1 = vpop.f32.mrf.mxu1 }
 0x243   :  { %1014 = vst [vmem:[#allocation11] sm:$0xff] %v989_v14  ;;  %v991_v63 = vadd.f32 %v990_v1, %v913_v15 }
 0x244   :  { %v917_v16 = vpop.f32.mrf.mxu0  ;;  %v994_v17 = vpop.f32.mrf.mxu1 }
 0x245   :  { %1015 = vst [vmem:[#allocation11 + $0x8] sm:$0xff] %v991_v63  ;;  %v995_v8 = vadd.f32 %v994_v17, %v917_v16 }
 0x246   :  { %v919_v18 = vpop.f32.mrf.mxu0  ;;  %v996_v11 = vpop.f32.mrf.mxu1 }
 0x247   :  { %1016 = vst [vmem:[#allocation11 + $0x10] sm:$0xff] %v995_v8  ;;  %v997_v19 = vadd.f32 %v996_v11, %v919_v18 }
 0x249   :  { %1017 = vst [vmem:[#allocation11 + $0x18] sm:$0xff] %v997_v19 }
 0x24a   :  { %1177 = shalt.err (!%p1174_p10)
}
 0x24b   :  { %1029 = dma.vmem_to_hbm [thread:$0]  %s1024_s3, 512, %s1294_s4, [#allocation5], %s1198_s25, %s1198_s25, %s1199_s26  }
 0x24c   :  { %1192 = dma.done.wait [#allocation5], 512  }
 0x24d   :  { %1193 = vsyncadd [#allocation5], 4294966784 }
 0x24e   :  { %1033 = vsyncpa [#allocation4], 1 }
 0x24f   :  { %1034 = vsyncpa [#allocation7], 1 }
 0x250   :  { %1035 = vsyncpa [#allocation10], 1 }
 0x251   :  { %1036 = vsyncpa [#allocation5], 1 }

</bundles_post_ra>
